<compile_context>
chip_gen: v7x
topology: tpu7x:2x2x1
jax: 0.10.0
libtpu: 0.0.40
codegen_flags: <defaults>
</compile_context>

<pallas_src>
import functools

import jax
import jax.numpy as jnp
from jax import lax
from jax.experimental import pallas as pl
from jax.experimental.pallas import tpu as pltpu


def _self_attn_kernel(x_proj_ref, x_res_ref, wq_ref, wk_ref, wv_ref,
                      bq_ref, bk_ref, bv_ref, gamma_ref, o_ref,
                      q_scr, k_scr, v_scr, *, tq):
    qi = pl.program_id(1)

    # ---- once per batch element: q/k/v projections, kept resident in bf16 ---
    @pl.when(qi == 0)
    def _():
        x_p = x_proj_ref[0]                                    # (C, N) bf16
        # 1x1 convs == channel matmuls.  bf16 operands -> native MXU path with
        # f32 accumulation; bias add stays f32; three separate dots so no
        # fused (2*Cq + C, N) f32 temporary is ever live.
        q = jnp.dot(wq_ref[...], x_p, preferred_element_type=jnp.float32)
        q_scr[...] = (q + bq_ref[...]).astype(jnp.bfloat16)    # (Cq, N)
        k = jnp.dot(wk_ref[...], x_p, preferred_element_type=jnp.float32)
        k_scr[...] = (k + bk_ref[...]).astype(jnp.bfloat16)    # (Cq, N)
        v = jnp.dot(wv_ref[...], x_p, preferred_element_type=jnp.float32)
        v_scr[...] = (v + bv_ref[...]).astype(jnp.bfloat16)    # (C, N)

    # ---- per query tile ------------------------------------------------------
    start = pl.multiple_of(qi * tq, tq)
    q_t = q_scr[:, pl.ds(start, tq)]                           # (Cq, TQ) bf16

    # energy[i, j] = <q_{start+i}, k_j> : TN-form dot (contract dim 0 of both)
    # — lhs-transposed matmul is MXU-native, so no q transpose is materialized.
    energy = lax.dot_general(q_t, k_scr[...],
                             dimension_numbers=(((0,), (0,)), ((), ())),
                             preferred_element_type=jnp.float32)   # (TQ, N) f32

    # Row softmax over the full key axis; keep elementwise math in f32 (safe on
    # v5e, fine everywhere), cast to bf16 only as the MXU operand, and DEFER
    # the 1/l normalization past the second matmul.
    m = jnp.max(energy, axis=-1, keepdims=True)                # (TQ, 1)
    p = jnp.exp(energy - m)                                    # (TQ, N) f32, unnormalized
    l = jnp.sum(p, axis=-1, keepdims=True)                     # (TQ, 1)
    p_bf = p.astype(jnp.bfloat16)

    # out[c, i] = sum_j v[c, j] * p[i, j]  — NT dot_general (contract last
    # dims of both), contraction depth N, no k/v/p transposes.
    out = lax.dot_general(v_scr[...], p_bf,
                          dimension_numbers=(((1,), (1,)), ((), ())),
                          preferred_element_type=jnp.float32)      # (C, TQ) f32

    # Deferred softmax denominator folded with gamma into one small per-column
    # scale: only TQ reciprocals (exact), one (C, TQ) multiply total.
    scale = (gamma_ref[0] * pl.reciprocal(l, approx=False)).T      # (1, TQ)
    o_ref[0] = out * scale + x_res_ref[0]


def self_attn_forward(x_nchw, params, *, tq=256):
    """x_nchw: (B, C, W, H) float32.  Returns (B, C, W, H) float32."""
    wq, bq, wk, bk, wv, bv, gamma = params
    B, C, W, H = x_nchw.shape
    N = W * H
    Cq = wq.shape[0]

    # Query tile: largest multiple of 128 (<= tq) that divides N.
    # TODO(synk): odd spatial sizes (N % 128 != 0) fall back to a single full
    # (N, N) energy tile; large odd N would need a masked/padded query tiling.
    TQ = N
    cap = (min(tq, N) // 128) * 128
    for cand in range(cap, 0, -128):
        if N % cand == 0:
            TQ = cand
            break
    NQ = N // TQ

    # NCHW -> (B, C, N): pure reshape, no HBM transpose on input or output.
    x_cn = x_nchw.reshape(B, C, N).astype(jnp.float32)   # f32 residual (exact)
    x_bf = x_cn.astype(jnp.bfloat16)                     # bf16 projection operand

    wq_b = wq.astype(jnp.bfloat16)
    wk_b = wk.astype(jnp.bfloat16)
    wv_b = wv.astype(jnp.bfloat16)
    bq_c = bq.reshape(Cq, 1).astype(jnp.float32)
    bk_c = bk.reshape(Cq, 1).astype(jnp.float32)
    bv_c = bv.reshape(C, 1).astype(jnp.float32)
    gamma_f = gamma.reshape(1).astype(jnp.float32)

    kernel = functools.partial(_self_attn_kernel, tq=TQ)

    out_cn = pl.pallas_call(
        kernel,
        out_shape=jax.ShapeDtypeStruct((B, C, N), jnp.float32),
        grid=(B, NQ),
        in_specs=[
            # bf16 x, projection only: DMA'd once per batch element, resident.
            pl.BlockSpec((1, C, N), lambda b, q: (b, 0, 0)),
            # f32 x residual: small per-tile block, pipelined under the matmuls.
            pl.BlockSpec((1, C, TQ), lambda b, q: (b, 0, q)),
            pl.BlockSpec((Cq, C), lambda b, q: (0, 0)),    # Wq (bf16)
            pl.BlockSpec((Cq, C), lambda b, q: (0, 0)),    # Wk (bf16)
            pl.BlockSpec((C, C), lambda b, q: (0, 0)),     # Wv (bf16)
            pl.BlockSpec((Cq, 1), lambda b, q: (0, 0)),    # bq (f32)
            pl.BlockSpec((Cq, 1), lambda b, q: (0, 0)),    # bk (f32)
            pl.BlockSpec((C, 1), lambda b, q: (0, 0)),     # bv (f32)
            pl.BlockSpec(memory_space=pltpu.SMEM),         # gamma scalar
        ],
        out_specs=pl.BlockSpec((1, C, TQ), lambda b, q: (b, 0, q)),  # lane-dense
        scratch_shapes=[
            pltpu.VMEM((Cq, N), jnp.bfloat16),   # q, resident per batch element
            pltpu.VMEM((Cq, N), jnp.bfloat16),   # k
            pltpu.VMEM((C, N), jnp.bfloat16),    # v
        ],
        compiler_params=pltpu.CompilerParams(
            dimension_semantics=("parallel", "arbitrary"),
            vmem_limit_bytes=48 * 1024 * 1024,   # explicit (v5e default is 16 MiB)
        ),
    )(x_bf, x_cn, wq_b, wk_b, wv_b, bq_c, bk_c, bv_c, gamma_f)

    return out_cn.reshape(B, C, W, H)


def init_params(key, in_dim):
    """Deterministic params matching Self_Attn.__init__ shapes.

    Conv weights kept in PyTorch (C_out, C_in) layout (kernel_size=1 squeezed).
    Requires in_dim >= 8 (out_channels = in_dim // 8).
    """
    cq = in_dim // 8
    ks = jax.random.split(key, 6)
    scale = 1.0 / jnp.sqrt(jnp.float32(in_dim))
    wq = jax.random.normal(ks[0], (cq, in_dim), jnp.float32) * scale
    bq = jax.random.normal(ks[1], (cq,), jnp.float32) * scale
    wk = jax.random.normal(ks[2], (cq, in_dim), jnp.float32) * scale
    bk = jax.random.normal(ks[3], (cq,), jnp.float32) * scale
    wv = jax.random.normal(ks[4], (in_dim, in_dim), jnp.float32) * scale
    bv = jax.random.normal(ks[5], (in_dim,), jnp.float32) * scale
    gamma = jnp.zeros((1,), jnp.float32)   # nn.Parameter(torch.zeros(1))
    return (wq, bq, wk, bk, wv, bv, gamma)


def self_attn_reference(x_nchw, params):
    """Pure-JAX f32 reference mirroring the PyTorch forward exactly."""
    wq, bq, wk, bk, wv, bv, gamma = params
    B, C, W, H = x_nchw.shape
    N = W * H
    xf = x_nchw.reshape(B, C, N)
    q = jnp.einsum("oc,bcn->bon", wq, xf) + bq[None, :, None]    # (B, Cq, N)
    k = jnp.einsum("oc,bcn->bon", wk, xf) + bk[None, :, None]    # (B, Cq, N)
    v = jnp.einsum("oc,bcn->bon", wv, xf) + bv[None, :, None]    # (B, C,  N)
    energy = jnp.einsum("bci,bcj->bij", q, k)                    # (B, N, N)
    att = jax.nn.softmax(energy, axis=-1)
    out = jnp.einsum("bcj,bij->bci", v, att)                     # (B, C, N)
    out = gamma[0] * out + xf
    return out.reshape(B, C, W, H)


if __name__ == "__main__":
    # Small shapes: C >= 8; N = W*H = 512 -> two query tiles of 256 so the
    # multi-tile path (resident q/k/v scratch across q tiles) is exercised.
    B, C, W, H = 2, 16, 16, 32
    key = jax.random.PRNGKey(0)
    kx, kp = jax.random.split(key)
    x = jax.random.normal(kx, (B, C, W, H), jnp.float32)
    params = init_params(kp, C)

    # gamma = 0 (module default init): output must equal the input residual —
    # tight tolerance checks the projection/store/tiling plumbing.
    out0 = jax.block_until_ready(self_attn_forward(x, params))
    ref0 = self_attn_reference(x, params)
    assert jnp.allclose(out0, ref0, atol=1e-5, rtol=1e-5), "gamma=0 mismatch"

    # Nonzero gamma exercises the attention hot path.  Kernel uses bf16 MXU
    # operands with f32 accumulation, so compare against the f32 reference
    # with a relaxed tolerance.
    params_nz = params[:-1] + (jnp.array([0.7], jnp.float32),)
    out1 = jax.block_until_ready(self_attn_forward(x, params_nz))
    ref1 = self_attn_reference(x, params_nz)
    assert jnp.allclose(out1, ref1, atol=5e-2, rtol=5e-2), "gamma!=0 mismatch"

    print("KERNEL_OK")
</pallas_src>

<mosaic_0001>
module attributes {stable_mosaic.version = 11 : i64} {
  func.func @_self_attn_kernel(%arg0: i32, %arg1: i32, %arg2: memref<1x16x512xbf16, #tpu.memory_space<vmem>>, %arg3: memref<1x16x256xf32, #tpu.memory_space<vmem>>, %arg4: memref<2x16xbf16, #tpu.memory_space<vmem>>, %arg5: memref<2x16xbf16, #tpu.memory_space<vmem>>, %arg6: memref<16x16xbf16, #tpu.memory_space<vmem>>, %arg7: memref<2x1xf32, #tpu.memory_space<vmem>>, %arg8: memref<2x1xf32, #tpu.memory_space<vmem>>, %arg9: memref<16x1xf32, #tpu.memory_space<vmem>>, %arg10: memref<1xf32, #tpu.memory_space<smem>>, %arg11: memref<1x16x256xf32, #tpu.memory_space<vmem>>, %arg12: memref<2x512xbf16, #tpu.memory_space<vmem>>, %arg13: memref<2x512xbf16, #tpu.memory_space<vmem>>, %arg14: memref<16x512xbf16, #tpu.memory_space<vmem>>) attributes {dimension_semantics = [#tpu.dimension_semantics<parallel>, #tpu.dimension_semantics<arbitrary>], iteration_bounds = array<i64: 2, 2>, scalar_prefetch = 0 : i64, scratch_operands = 3 : i64, tpu.core_type = #tpu.core_type<tc>, window_params = [{transform_indices = @transform_0, window_bounds = array<i64: 1, 16, 512>}, {transform_indices = @transform_1, window_bounds = array<i64: 1, 16, 256>}, {pipeline_mode = #tpu.pipeline_mode<synchronous>, transform_indices = @transform_2, window_bounds = array<i64: 2, 16>}, {pipeline_mode = #tpu.pipeline_mode<synchronous>, transform_indices = @transform_3, window_bounds = array<i64: 2, 16>}, {pipeline_mode = #tpu.pipeline_mode<synchronous>, transform_indices = @transform_4, window_bounds = array<i64: 16, 16>}, {pipeline_mode = #tpu.pipeline_mode<synchronous>, transform_indices = @transform_5, window_bounds = array<i64: 2, 1>}, {pipeline_mode = #tpu.pipeline_mode<synchronous>, transform_indices = @transform_6, window_bounds = array<i64: 2, 1>}, {pipeline_mode = #tpu.pipeline_mode<synchronous>, transform_indices = @transform_7, window_bounds = array<i64: 16, 1>}, {transform_indices = @transform_8, window_bounds = array<i64: 1>}, {transform_indices = @transform_9, window_bounds = array<i64: 1, 16, 256>}]} {
    %c0_i32 = arith.constant 0 : i32
    %0 = arith.cmpi eq, %arg1, %c0_i32 : i32
    %1 = arith.extui %0 : i1 to i32
    %c0_i32_0 = arith.constant 0 : i32
    %2 = arith.cmpi ne, %1, %c0_i32_0 : i32
    scf.if %2 {
      %c0_15 = arith.constant 0 : index
      %c0_16 = arith.constant 0 : index
      %c0_17 = arith.constant 0 : index
      %32 = vector.load %arg2[%c0_15, %c0_16, %c0_17] : memref<1x16x512xbf16, #tpu.memory_space<vmem>>, vector<1x16x512xbf16>
      %33 = vector.shape_cast %32 : vector<1x16x512xbf16> to vector<16x512xbf16>
      %c0_18 = arith.constant 0 : index
      %c0_19 = arith.constant 0 : index
      %34 = vector.load %arg4[%c0_18, %c0_19] : memref<2x16xbf16, #tpu.memory_space<vmem>>, vector<2x16xbf16>
      %cst_20 = arith.constant dense<0.000000e+00> : vector<2x512xf32>
      %35 = tpu.matmul %34, %33, %cst_20 {dimension_numbers = #tpu.dot_dimension_numbers<[1], [0], [0], [1], [0, 0, 1, 1], [], []>} : vector<2x16xbf16>, vector<16x512xbf16>, vector<2x512xf32> -> vector<2x512xf32>
      %c0_21 = arith.constant 0 : index
      %c0_22 = arith.constant 0 : index
      %36 = vector.load %arg7[%c0_21, %c0_22] : memref<2x1xf32, #tpu.memory_space<vmem>>, vector<2x1xf32>
      %37 = vector.broadcast %36 : vector<2x1xf32> to vector<2x512xf32>
      %38 = arith.addf %35, %37 : vector<2x512xf32>
      %39 = arith.truncf %38 : vector<2x512xf32> to vector<2x512xbf16>
      %c0_23 = arith.constant 0 : index
      %c0_24 = arith.constant 0 : index
      %40 = vector.load %arg12[%c0_23, %c0_24] : memref<2x512xbf16, #tpu.memory_space<vmem>>, vector<2x512xbf16>
      tpu.vector_store %arg12[%c0_23, %c0_24], %39 {strides = array<i32>} : memref<2x512xbf16, #tpu.memory_space<vmem>>, vector<2x512xbf16>,
      %c0_25 = arith.constant 0 : index
      %c0_26 = arith.constant 0 : index
      %41 = vector.load %arg5[%c0_25, %c0_26] : memref<2x16xbf16, #tpu.memory_space<vmem>>, vector<2x16xbf16>
      %cst_27 = arith.constant dense<0.000000e+00> : vector<2x512xf32>
      %42 = tpu.matmul %41, %33, %cst_27 {dimension_numbers = #tpu.dot_dimension_numbers<[1], [0], [0], [1], [0, 0, 1, 1], [], []>} : vector<2x16xbf16>, vector<16x512xbf16>, vector<2x512xf32> -> vector<2x512xf32>
      %c0_28 = arith.constant 0 : index
      %c0_29 = arith.constant 0 : index
      %43 = vector.load %arg8[%c0_28, %c0_29] : memref<2x1xf32, #tpu.memory_space<vmem>>, vector<2x1xf32>
      %44 = vector.broadcast %43 : vector<2x1xf32> to vector<2x512xf32>
      %45 = arith.addf %42, %44 : vector<2x512xf32>
      %46 = arith.truncf %45 : vector<2x512xf32> to vector<2x512xbf16>
      %c0_30 = arith.constant 0 : index
      %c0_31 = arith.constant 0 : index
      %47 = vector.load %arg13[%c0_30, %c0_31] : memref<2x512xbf16, #tpu.memory_space<vmem>>, vector<2x512xbf16>
      tpu.vector_store %arg13[%c0_30, %c0_31], %46 {strides = array<i32>} : memref<2x512xbf16, #tpu.memory_space<vmem>>, vector<2x512xbf16>,
      %c0_32 = arith.constant 0 : index
      %c0_33 = arith.constant 0 : index
      %48 = vector.load %arg6[%c0_32, %c0_33] : memref<16x16xbf16, #tpu.memory_space<vmem>>, vector<16x16xbf16>
      %cst_34 = arith.constant dense<0.000000e+00> : vector<16x512xf32>
      %49 = tpu.matmul %48, %33, %cst_34 {dimension_numbers = #tpu.dot_dimension_numbers<[1], [0], [0], [1], [0, 0, 1, 1], [], []>} : vector<16x16xbf16>, vector<16x512xbf16>, vector<16x512xf32> -> vector<16x512xf32>
      %c0_35 = arith.constant 0 : index
      %c0_36 = arith.constant 0 : index
      %50 = vector.load %arg9[%c0_35, %c0_36] : memref<16x1xf32, #tpu.memory_space<vmem>>, vector<16x1xf32>
      %51 = vector.broadcast %50 : vector<16x1xf32> to vector<16x512xf32>
      %52 = arith.addf %49, %51 : vector<16x512xf32>
      %53 = arith.truncf %52 : vector<16x512xf32> to vector<16x512xbf16>
      %c0_37 = arith.constant 0 : index
      %c0_38 = arith.constant 0 : index
      %54 = vector.load %arg14[%c0_37, %c0_38] : memref<16x512xbf16, #tpu.memory_space<vmem>>, vector<16x512xbf16>
      tpu.vector_store %arg14[%c0_37, %c0_38], %53 {strides = array<i32>} : memref<16x512xbf16, #tpu.memory_space<vmem>>, vector<16x512xbf16>,
    } else {
    }
    %c256_i32 = arith.constant 256 : i32
    %3 = arith.muli %arg1, %c256_i32 : i32
    %4 = tpu.assume_multiple %3, 256 : i32
    %c0 = arith.constant 0 : index
    %5 = arith.index_cast %4 : i32 to index
    %6 = vector.load %arg12[%c0, %5] : memref<2x512xbf16, #tpu.memory_space<vmem>>, vector<2x256xbf16>
    %c0_1 = arith.constant 0 : index
    %c0_2 = arith.constant 0 : index
    %7 = vector.load %arg13[%c0_1, %c0_2] : memref<2x512xbf16, #tpu.memory_space<vmem>>, vector<2x512xbf16>
    %cst = arith.constant dense<0.000000e+00> : vector<256x512xf32>
    %8 = tpu.matmul %6, %7, %cst {dimension_numbers = #tpu.dot_dimension_numbers<[0], [0], [1], [1], [0, 1, 1, 1], [], []>} : vector<2x256xbf16>, vector<2x512xbf16>, vector<256x512xf32> -> vector<256x512xf32>
    %cst_3 = arith.constant dense<0xFF800000> : vector<256xf32>
    %9 = vector.multi_reduction <maximumf>, %8, %cst_3 [1] : vector<256x512xf32> to vector<256xf32>
    %10 = vector.shape_cast %9 : vector<256xf32> to vector<256x1xf32>
    %11 = vector.broadcast %10 : vector<256x1xf32> to vector<256x512xf32>
    %12 = arith.subf %8, %11 : vector<256x512xf32>
    %13 = math.exp %12 : vector<256x512xf32>
    %cst_4 = arith.constant dense<0.000000e+00> : vector<256xf32>
    %14 = vector.multi_reduction <add>, %13, %cst_4 [1] : vector<256x512xf32> to vector<256xf32>
    %15 = vector.shape_cast %14 : vector<256xf32> to vector<256x1xf32>
    %16 = arith.truncf %13 : vector<256x512xf32> to vector<256x512xbf16>
    %c0_5 = arith.constant 0 : index
    %c0_6 = arith.constant 0 : index
    %17 = vector.load %arg14[%c0_5, %c0_6] : memref<16x512xbf16, #tpu.memory_space<vmem>>, vector<16x512xbf16>
    %cst_7 = arith.constant dense<0.000000e+00> : vector<16x256xf32>
    %18 = tpu.matmul %17, %16, %cst_7 {dimension_numbers = #tpu.dot_dimension_numbers<[1], [1], [0], [0], [0, 0, 1, 0], [], []>} : vector<16x512xbf16>, vector<256x512xbf16>, vector<16x256xf32> -> vector<16x256xf32>
    %c0_8 = arith.constant 0 : index
    %19 = memref.load %arg10[%c0_8] : memref<1xf32, #tpu.memory_space<smem>>
    %20 = tpu.reciprocal %15 : vector<256x1xf32> -> vector<256x1xf32>
    %21 = vector.broadcast %19 : f32 to vector<256x1xf32>
    %22 = arith.mulf %21, %20 : vector<256x1xf32>
    %23 = tpu.transpose %22, [1, 0] : vector<256x1xf32> -> vector<1x256xf32>
    %24 = vector.broadcast %23 : vector<1x256xf32> to vector<16x256xf32>
    %25 = arith.mulf %18, %24 : vector<16x256xf32>
    %c0_9 = arith.constant 0 : index
    %c0_10 = arith.constant 0 : index
    %c0_11 = arith.constant 0 : index
    %26 = vector.load %arg3[%c0_9, %c0_10, %c0_11] : memref<1x16x256xf32, #tpu.memory_space<vmem>>, vector<1x16x256xf32>
    %27 = vector.shape_cast %26 : vector<1x16x256xf32> to vector<16x256xf32>
    %28 = arith.addf %25, %27 : vector<16x256xf32>
    %c0_12 = arith.constant 0 : index
    %c0_13 = arith.constant 0 : index
    %c0_14 = arith.constant 0 : index
    %29 = vector.load %arg11[%c0_12, %c0_13, %c0_14] : memref<1x16x256xf32, #tpu.memory_space<vmem>>, vector<1x16x256xf32>
    %30 = vector.shape_cast %29 : vector<1x16x256xf32> to vector<16x256xf32>
    %31 = vector.shape_cast %28 : vector<16x256xf32> to vector<1x16x256xf32>
    tpu.vector_store %arg11[%c0_12, %c0_13, %c0_14], %31 {strides = array<i32>} : memref<1x16x256xf32, #tpu.memory_space<vmem>>, vector<1x16x256xf32>,
    return
  }
  func.func @transform_0(%arg0: i32, %arg1: i32) -> (i32, i32, i32) {
    %c0_i32 = arith.constant 0 : i32
    %c0_i32_0 = arith.constant 0 : i32
    %c0_i32_1 = arith.constant 0 : i32
    return %arg0, %c0_i32, %c0_i32_0 : i32, i32, i32
  }
  func.func @transform_1(%arg0: i32, %arg1: i32) -> (i32, i32, i32) {
    %c0_i32 = arith.constant 0 : i32
    %c0_i32_0 = arith.constant 0 : i32
    return %arg0, %c0_i32, %arg1 : i32, i32, i32
  }
  func.func @transform_2(%arg0: i32, %arg1: i32) -> (i32, i32) {
    %c0_i32 = arith.constant 0 : i32
    %c0_i32_0 = arith.constant 0 : i32
    %c0_i32_1 = arith.constant 0 : i32
    return %c0_i32, %c0_i32_0 : i32, i32
  }
  func.func @transform_3(%arg0: i32, %arg1: i32) -> (i32, i32) {
    %c0_i32 = arith.constant 0 : i32
    %c0_i32_0 = arith.constant 0 : i32
    %c0_i32_1 = arith.constant 0 : i32
    return %c0_i32, %c0_i32_0 : i32, i32
  }
  func.func @transform_4(%arg0: i32, %arg1: i32) -> (i32, i32) {
    %c0_i32 = arith.constant 0 : i32
    %c0_i32_0 = arith.constant 0 : i32
    %c0_i32_1 = arith.constant 0 : i32
    return %c0_i32, %c0_i32_0 : i32, i32
  }
  func.func @transform_5(%arg0: i32, %arg1: i32) -> (i32, i32) {
    %c0_i32 = arith.constant 0 : i32
    %c0_i32_0 = arith.constant 0 : i32
    %c0_i32_1 = arith.constant 0 : i32
    return %c0_i32, %c0_i32_0 : i32, i32
  }
  func.func @transform_6(%arg0: i32, %arg1: i32) -> (i32, i32) {
    %c0_i32 = arith.constant 0 : i32
    %c0_i32_0 = arith.constant 0 : i32
    %c0_i32_1 = arith.constant 0 : i32
    return %c0_i32, %c0_i32_0 : i32, i32
  }
  func.func @transform_7(%arg0: i32, %arg1: i32) -> (i32, i32) {
    %c0_i32 = arith.constant 0 : i32
    %c0_i32_0 = arith.constant 0 : i32
    %c0_i32_1 = arith.constant 0 : i32
    return %c0_i32, %c0_i32_0 : i32, i32
  }
  func.func @transform_8(%arg0: i32, %arg1: i32) -> i32 {
    %c0_i32 = arith.constant 0 : i32
    %c0_i32_0 = arith.constant 0 : i32
    return %c0_i32 : i32
  }
  func.func @transform_9(%arg0: i32, %arg1: i32) -> (i32, i32, i32) {
    %c0_i32 = arith.constant 0 : i32
    %c0_i32_0 = arith.constant 0 : i32
    return %arg0, %c0_i32, %arg1 : i32, i32, i32
  }
}

</mosaic_0001>

<bundles_post_ra>
// kernel: tpu_custom_call.1
= control target key start
LH: loop header
LB: loop body
LE: loop exit
PB: predicated region body
PF: predicated region fallthrough
CT: control target
= control target key end

     0   :  { %s4492_s0 = inlined_call_operand.hbm [shape: bf16[2,16,512], index: 0, kind: input, shape index: {}]   ;;  %s4493_s1 = inlined_call_operand.hbm [shape: f32[2,16,512], index: 1, kind: input, shape index: {}]   ;;  %s4494_s2 = inlined_call_operand.vmem [shape: bf16[2,16], index: 2, kind: input, shape index: {}]   ;;  %s4495_s3 = inlined_call_operand.vmem [shape: bf16[2,16], index: 3, kind: input, shape index: {}]   ;;  %s4496_s4 = inlined_call_operand.vmem [shape: bf16[16,16], index: 4, kind: input, shape index: {}]   ;;  %s4497_s5 = inlined_call_operand.vmem [shape: f32[2,1], index: 5, kind: input, shape index: {}]   ;;  %s4498_s6 = inlined_call_operand.vmem [shape: f32[2,1], index: 6, kind: input, shape index: {}]   ;;  %s4499_s7 = inlined_call_operand.vmem [shape: f32[16,1], index: 7, kind: input, shape index: {}]   ;;  %s4500_s8 = inlined_call_operand.<no memory space> [shape: f32[1], index: 8, kind: input, shape index: {}]   ;;  %s4501_s9 = inlined_call_operand.hbm [shape: f32[2,16,512], index: 9, kind: output, shape index: {}]  }
   0x1   :  { %4597 = sst [smem:[#allocation100_spill]] %s4492_s0 }
   0x2   :  { %4598 = sst [smem:[#allocation101_spill]] %s4494_s2 }
   0x3   :  { %4599 = sst [smem:[#allocation102_spill]] %s4495_s3 }
   0x4   :  { %4600 = sst [smem:[#allocation103_spill]] %s4496_s4 }
   0x5   :  { %4601 = sst [smem:[#allocation104_spill]] %s4497_s5 }
   0x6   :  { %4602 = sst [smem:[#allocation105_spill]] %s4498_s6 }
   0x7   :  { %4603 = sst [smem:[#allocation106_spill]] %s4499_s7 }
   0x8   :  { %4604 = sst [smem:[#allocation107_spill]] %s4501_s9 }
   0x9   :  { %14 = sst [smem:[#allocation5]] %s4500_s8 }
   0xa   :  { %15 = vsyncpa [#allocation7], 0 }
   0xb   :  { %17 = vsyncpa [#allocation7 + $0x1], 0 }
   0xc   :  { %18 = vsyncpa [#allocation10], 0 }
   0xd   :  { %20 = vsyncpa [#allocation10 + $0x1], 0 }
   0xe   :  { %21 = vsyncpa [#allocation8], 0 }
   0xf   :  { %23 = vsyncpa [#allocation8 + $0x1], 0  ;;  %s3269_s11 = smov 0   ;;  %s3271_s12 = smov 0  }
  0x10   :  { %s3273_s13 = smov 0   ;;  %s3275_s14 = smov 0  }
  0x11   :  { %s3277_s15 = smov 0   ;;  %s3279_s16 = smov 0  }
  0x12   :  { %s3281_s17 = smov 0   ;;  %s3283_s8 = smov 0  }
  0x13   :  { %s3285_s18 = smov 0   ;;  %s3287_s19 = smov 0  }
  0x14   :  { %s3289_s20 = smov 0  }
  0x15 LB: > { %4605 = sst [smem:[#allocation15_spill]] %s3161_s11  ;;  %s4502_s21 = sadd.s32 4294967295, %s3201_s20   ;;  %s3201_s20 = sphi %s3289_s20, %s29_s20   ;;  %s3197_s19 = sphi %s3287_s19, %s4814_s19   ;;  %s3193_s18 = sphi %s3285_s18, %s4813_s18   ;;  %s3189_s8 = sphi %s3283_s8, %s4812_s8   ;;  %s3185_s17 = sphi %s3281_s17, %s4811_s17   ;;  %s3181_s16 = sphi %s3279_s16, %s4810_s16   ;;  %s3177_s15 = sphi %s3277_s15, %s4809_s15   ;;  %s3173_s14 = sphi %s3275_s14, %s4808_s14   ;;  %s3169_s13 = sphi %s3273_s13, %s4807_s13   ;;  %s3165_s12 = sphi %s3271_s12, %s4806_s12   ;;  %s3161_s11 = sphi %s3269_s11, %s4805_s11  }
  0x16   : > { %4606 = sst [smem:[#allocation16_spill]] %s3189_s8  ;;  %p55_p0 = scmp.ne.s32.totalorder %s3181_s16, %s3177_s15 }
  0x17   : > { %p4505_p1 = scmp.eq.s32.totalorder %s3201_s20, 0  ;;  %p61_p2 = scmp.ne.s32.totalorder %s3177_s15, %s3173_s14 }
  0x18   : > { %p3331_p3 = scmp.eq.s32.totalorder %s4502_s21, 0  ;;  %p4504_p5 = scmp.lt.s32.totalorder %s3201_s20, 4 }
  0x19   : > { %p57_p4 = por %p4505_p1, %p55_p0  ;;  %s309_s26 = sand.u32 1, %s3181_s16  }
  0x1a   : > { %p3340_p6 = por %p3331_p3, %p61_p2  ;;  %s2492_s27 = sshll.u32 %s309_s26, 5 }
  0x1b   : > { %s2564_s28 = sshll.u32 %s3197_s19, 9  ;;  %s4609_s0 = sld [smem:[#allocation100_spill]] }
  0x1c   : > { %s4608_s25 = scalar_select %p3340_p6, 1, 0 }
  0x1d   : > { %s313_s14 = scalar_lea.vmem [#allocation6], %s2492_s27  ;;  %p3355_p7 = pnand %p4504_p5, %p57_p4 }
  0x1e   : > { %s320_s23 = sshll.u32 %s313_s14, 4  ;;  %s3360_s22 = scalar_lea.sflag [#allocation7], %s309_s26  ;;  %s3351_s23 = int_to_ptr.vmem [resolvable:$true] %s320_s23 }
  0x1f   : > { %p3017_p10 = pneg %p3355_p7 }
  0x21   : > { %s3349_s10 = scalar_lea.hbm %s4609_s0, %s2564_s28  ;;  %s3020_s30 = scalar_lea.hbm %s4609_s0, 1024 }
  0x22   : > { %s3015_s28 = scalar_lea.hbm %s3349_s10, 512  ;;  %p3021_p13 = scmp.lt.u32.totalorder %s3349_s10, %s4609_s0 }
  0x23   : > { %p3016_p9 = scmp.ne.s32.totalorder %s3349_s10, %s3015_s28  ;;  %p3022_p0 = scmp.lt.u32.totalorder %s3020_s30, %s3015_s28 }
  0x24   : > { %p3024_p4 = scmp.lt.u32.totalorder %s3015_s28, %s3349_s10 }
  0x25   : > { %p3018_p11 = pnand %p3017_p10, %p3016_p9  ;;  %p3023_p2 = por %p3022_p0, %p3021_p13 }
  0x27   : > { %p3019_p12 = pneg %p3018_p11  ;;  %p3025_p5 = por %p3024_p4, %p3023_p2 }
  0x29   : > { %p3026_p1 = pnand %p3025_p5, %p3019_p12 }
  0x2b   : > { %3029 = shalt.err (!%p3026_p1)
}
  0x2c   : > { %s3030_s26 = scalar_lea.vmem %s3351_s23, 512  ;;  %s3203_s27 = smov [#allocation6]  }
  0x2d   : > { %p3031_p9 = scmp.ne.s32.totalorder %s3351_s23, %s3030_s26  ;;  %s3035_s29 = sshll.u32 %s3203_s27, 4  ;;  %s3036_s29 = int_to_ptr.vmem [resolvable:$false] %s3035_s29 }
  0x2e   : > { %s3037_s9 = scalar_lea.vmem %s3036_s29, 1024  ;;  %p3038_p6 = scmp.lt.s32.totalorder %s3351_s23, %s3036_s29 }
  0x2f   : > { %p3033_p11 = pnand %p3031_p9, %p3017_p10  ;;  %p3039_p13 = scmp.lt.s32.totalorder %s3037_s9, %s3030_s26 }
  0x31   : > { %p3034_p8 = pneg %p3033_p11  ;;  %p3040_p0 = por %p3039_p13, %p3038_p6 }
  0x33   : > { %p3041_p2 = pnand %p3040_p0, %p3034_p8 }
  0x35   : > { %3044 = shalt.err (!%p3041_p2)
}
  0x36   : > { %s4507_s28 = smov 256   ;;  %s4508_s30 = smov 16  }
  0x37   : > { %2578 = dma.hbm_to_vmem [thread:$0]  (!%p3355_p7), %s3349_s10, 512, %s3351_s23, %s3360_s22, %s4507_s28, %s4507_s28, %s4508_s30  }
  0x38   : > { %p351_p1 = scmp.lt.s32.totalorder %s3201_s20, 5  ;;  %p4611_p5 = scmp.ge.s32.totalorder %s3201_s20, 1 }
  0x39   : > { %s2489_s26 = sadd.s32 4294967294, %s3201_s20   ;;  %s38_s27 = sadd.s32 1, %s3193_s18 }
  0x3a   : > { %p3394_p6 = pnand %p4611_p5, %p351_p1  ;;  %p39_p8 = scmp.ge.s32.totalorder %s38_s27, 2 }
  0x3b   : > { %s76_s29 = sadd.s32 1, %s3169_s13  ;;  %p83_p10 = scmp.ne.s32.totalorder %s3169_s13, %s3165_s12 }
  0x3c   : > { %p89_p12 = scmp.ne.s32.totalorder %s3165_s12, %s3161_s11  ;;  %s4816_s27 = smov (%p39_p8, %s38_s27), 0 }
  0x3d   : > { %4613 = sst [smem:[#allocation17_spill]] %s4816_s27  ;;  %s4614_s21 = sadd.s32 1, %s3197_s19 }
  0x3e   : > { %s4818_s21 = smov (!%p39_p8, %s4614_s21), %s3197_s19  ;;  %s72_s22 = ssub.s32 %s3193_s18, %s4816_s27 }
  0x3f   : > { %p4615_p7 = scmp.eq.s32.totalorder %s3201_s20, 0  ;;  %p43_p9 = scmp.ge.s32.totalorder %s4818_s21, 2 }
  0x40   : > { %p3420_p11 = por %p89_p12, %p3331_p3  ;;  %s4618_s9 = sadd.s32 4294967295, %s3201_s20  }
  0x41   : > { %p3414_p4 = por %p83_p10, %p4615_p7  ;;  %p262_p13 = scmp.eq.s32.totalorder %s4618_s9, 3 }
  0x42   : > { %s4617_s10 = scalar_select %p3420_p11, 1, 0 }
  0x43   : > { %p268_p0 = scmp.eq.s32.totalorder %s2489_s26, 3  ;;  %s4820_s21 = smov (%p43_p9, %s4818_s21), 0 }
  0x44   : > { %4619 = sst [smem:[#allocation18_spill]] %s4820_s21  ;;  %p3428_p2 = por %p262_p13, %p83_p10 }
  0x45   : > { %p3432_p1 = por %p268_p0, %p89_p12  ;;  %s45_s24 = ssub.s32 %s3197_s19, %s4820_s21 }
  0x46   : > { %s4620_s28 = scalar_select %p3428_p2, 1, 0 }
  0x47   : > { %s4622_s30 = scalar_select %p3432_p1, 1, 0 }
  0x48   : > { %4621 = sst [smem:[#allocation19_spill]] %s4620_s28  ;;  %s330_s0 = sand.u32 1, %s3169_s13  }
  0x49   : > { %4623 = sst [smem:[#allocation20_spill]] %s4622_s30  ;;  %p46_p3 = scmp.eq.s32.totalorder %s45_s24, 0 }
  0x4a   : > { %s73_s27 = sor.u32 %s72_s22, %s45_s24  ;;  %s4624_s9 = sadd.s32 1, %s3181_s16 }
  0x4b   : > { %p74_p5 = scmp.eq.s32.totalorder %s73_s27, 0  ;;  %s2495_s8 = sshll.u32 %s330_s0, 5 }
  0x4c   : > { %s3442_s26 = scalar_select %p46_p3, %s3181_s16, %s4624_s9  }
  0x4d   : > { %s3445_s11 = scalar_select %p74_p5, %s3169_s13, %s76_s29  }
  0x4e   : > { %s2496_s4 = sshll.u32 %s3193_s18, 1  ;;  %s2497_s3 = sshll.u32 %s3197_s19, 3 }
  0x4f   : > { %s340_s28 = sadd.s32 %s2497_s3, %s2496_s4  ;;  %s334_s6 = scalar_lea.vmem [#allocation9], %s2495_s8 }
  0x50   : > { %s343_s7 = sshll.u32 %s334_s6, 4  ;;  %s2498_s5 = sshll.u32 %s340_s28, 7  ;;  %s3449_s7 = int_to_ptr.vmem [resolvable:$true] %s343_s7 }
  0x51   : > { %s3454_s2 = scalar_lea.hbm %s4493_s1, %s2498_s5  ;;  %p4625_p8 = scmp.lt.s32.totalorder %s3201_s20, 4 }
  0x52   : > { %s3464_s3 = scalar_lea.sflag [#allocation10], %s330_s0  ;;  %s3045_s4 = scalar_lea.hbm %s3454_s2, 512 }
  0x53   : > { %p3460_p10 = pnand %p4625_p8, %p3414_p4  ;;  %p3046_p12 = scmp.ne.s32.totalorder %s3454_s2, %s3045_s4 }
  0x54   : > { %s3050_s8 = scalar_lea.hbm %s4493_s1, 2048  ;;  %p3051_p4 = scmp.lt.u32.totalorder %s3454_s2, %s4493_s1 }
  0x55   : > { %p3047_p7 = pneg %p3460_p10  ;;  %p3052_p0 = scmp.lt.u32.totalorder %s3050_s8, %s3045_s4 }
  0x56   : > { %p3054_p5 = scmp.lt.u32.totalorder %s3045_s4, %s3454_s2 }
  0x57   : > { %p3048_p9 = pnand %p3047_p7, %p3046_p12  ;;  %p3053_p3 = por %p3052_p0, %p3051_p4 }
  0x59   : > { %p3049_p13 = pneg %p3048_p9  ;;  %p3055_p8 = por %p3054_p5, %p3053_p3 }
  0x5b   : > { %p3056_p1 = pnand %p3055_p8, %p3049_p13 }
  0x5d   : > { %3059 = shalt.err (!%p3056_p1)
}
  0x5e   : > { %s3060_s0 = scalar_lea.vmem %s3449_s7, 512  ;;  %s3206_s29 = smov [#allocation9]  }
  0x5f   : > { %p3061_p12 = scmp.ne.s32.totalorder %s3449_s7, %s3060_s0  ;;  %s3065_s21 = sshll.u32 %s3206_s29, 4  ;;  %s3066_s21 = int_to_ptr.vmem [resolvable:$false] %s3065_s21 }
  0x60   : > { %s3067_s22 = scalar_lea.vmem %s3066_s21, 1024  ;;  %p3068_p11 = scmp.lt.s32.totalorder %s3449_s7, %s3066_s21 }
  0x61   : > { %p3063_p9 = pnand %p3061_p12, %p3047_p7  ;;  %p3069_p4 = scmp.lt.s32.totalorder %s3067_s22, %s3060_s0 }
  0x63   : > { %p3064_p2 = pneg %p3063_p9  ;;  %p3070_p0 = por %p3069_p4, %p3068_p11 }
  0x65   : > { %p3071_p3 = pnand %p3070_p0, %p3064_p2 }
  0x67   : > { %3074 = shalt.err (!%p3071_p3)
}
  0x68   : > { %s3207_s23 = smov 512   ;;  %s4627_s24 = smov 16  }
  0x69   : > { %s4628_s9 = smov 256   ;;  %355 = sbr.rel (%p3394_p6) target bundleno = 1243 (0x4db), region = 56 }
  0x6a   : > { %2581 = dma.hbm_to_vmem [thread:$0]  (!%p3460_p10), %s3454_s2, 512, %s3449_s7, %s3464_s3, %s3207_s23, %s4628_s9, %s4627_s24  }
  0x70   : > { %s357_s4 = sand.u32 1, %s3177_s15   ;;  %p4629_p11 = scmp.ne.s32.totalorder %s4608_s25, 0 }
  0x71   : > { %s2500_s5 = sshll.u32 %s357_s4, 5  ;;  %s358_s6 = scalar_lea.sflag [#allocation7], %s357_s4 }
  0x72   : > { %s361_s8 = scalar_lea.vmem [#allocation6], %s2500_s5 }
  0x73   : > { %3148 = dma.done.wait (%p4629_p11), %s358_s6, 512  }
  0x74   : > { %3150 = vsyncadd (%p4629_p11), %s358_s6, 4294966784  ;;  %s3502_s27 = sand.u32 1, %s3165_s12   ;;  %p4630_p6 = scmp.ne.s32.totalorder %s4617_s10, 0 }
  0x75   : > { %s2501_s2 = sshll.u32 %s3502_s27, 5  ;;  %s367_s7 = scalar_lea.sflag [#allocation10], %s3502_s27 }
  0x76   : > { %s3506_s14 = scalar_lea.vmem [#allocation9], %s2501_s2 }
  0x77   : > { %3152 = dma.done.wait (%p4630_p6), %s367_s7, 512  }
  0x78   : > { %3154 = vsyncadd (%p4630_p6), %s367_s7, 4294966784  ;;  %s3512_s3 = scalar_lea.vmem [#allocation11], %s2501_s2  ;;  %p2503_p2 = scmp.ne.s32.totalorder %s3185_s17, 0 }
  0x79   : > { %v2688_v0 = vld [vmem:[%s361_s8 + $0x4] ss:$16 sps:$4 sm:$0xff] (!%p2503_p2)   ;;  %v2690_v1 = vld [vmem:[%s361_s8 + $0xc] ss:$16 sps:$4 sm:$0xff] (!%p2503_p2)   ;;  %v3208_v2 = vmov (!%p2503_p2), 0   ;;  %s4631_s28 = sld [smem:[#allocation101_spill]] (!%p2503_p2)  ;;  %v547_v14 = vlaneseq (!%p2503_p2) }
  0x7a   : > { %416 = sbr.rel (%p2503_p2) target bundleno = 364 (0x16c), region = 68  ;;  %484 = vmatprep.mubr.bf16.mxu0 (!%p2503_p2), %v3208_v2  ;;  %525 = vmatprep.mubr.bf16.mxu1 (!%p2503_p2), %v3208_v2  ;;  %v2692_v3 = vld [vmem:[%s361_s8] ss:$16 sps:$4 sm:$0xff] (!%p2503_p2)   ;;  %v2693_v4 = vld [vmem:[%s361_s8 + $0x8] ss:$16 sps:$4 sm:$0xff] (!%p2503_p2)   ;;  %vm448_vm0 = vcmask (!%p2503_p2), 130048  }
  0x7b   : > { %452 = vmatprep.subr.bf16.mxu0 (!%p2503_p2), %v2688_v0  ;;  %2686 = vset.pattern.permute.xlu0 (!%p2503_p2), %v3208_v2  ;;  %s4632_s29 = sld [smem:[#allocation104_spill]] (!%p2503_p2)  ;;  %s4633_s23 = sld [smem:[#allocation106_spill]] (!%p2503_p2)  ;;  %v3209_v12 = vmov (!%p2503_p2), 1966171168   ;;  %v548_v17 = vshrl.u32 (!%p2503_p2), %v547_v14, 7 }
  0x7c   : > { %493 = vmatprep.subr.bf16.mxu1 (!%p2503_p2), %v2690_v1  ;;  %2687 = vset.pattern.permute.xlu1 (!%p2503_p2), %v3208_v2  ;;  %s4634_s4 = sld [smem:[#allocation105_spill]] (!%p2503_p2)  ;;  %s4635_s7 = sld [smem:[#allocation102_spill]] (!%p2503_p2)  ;;  %v545_v13 = vunpack.c.l.s4 (!%p2503_p2), %v3209_v12 }
  0x7d   : > { %453 = vmatpush1.bf16.msra.mxu0 (!%p2503_p2), %v2692_v3  ;;  %494 = vmatpush1.bf16.msra.mxu1 (!%p2503_p2), %v2693_v4 }
  0x7e   : > { %578 = vmatprep.subr.bf16.mxu0 (!%p2503_p2), %v2688_v0  ;;  %619 = vmatprep.subr.bf16.mxu1 (!%p2503_p2), %v2690_v1  ;;  %v546_v16 = vunpack.c.0.s8 (!%p2503_p2), %v545_v13 }
  0x7f   : > { %v421_v5 = vld [vmem:[%s4631_s28] sm:$0x1] (!%p2503_p2)  ;;  %s4636_s28 = sld [smem:[#allocation103_spill]] (!%p2503_p2) }
  0x80   : > { %2508 = vmatmul.mubr.msk.bf16.vlgmr.msra.gmra.mrb[0].mxu0 (!%p2503_p2), %vm448_vm0, %v421_v5  ;;  %2509 = vmatmul.mubr.msk.bf16.vlgmr.msra.gmra.mrb[0].mxu1 (!%p2503_p2), %vm448_vm0, %v421_v5  ;;  %v549_v25 = vsub.s32 (!%p2503_p2), %v546_v16, %v548_v17 }
  0x81   : > { %v422_v6 = vld [vmem:[%s4632_s29] sm:$0x3]  ;;  %579 = vmatpush1.bf16.msra.mxu0 %v2692_v3  ;;  %620 = vmatpush1.bf16.msra.mxu1 %v2693_v4  ;;  %v697_v9 = vld [vmem:[%s4633_s23 + $0x8] sm:$0xff] }
  0x82   : > { %v696_v7 = vld [vmem:[%s4633_s23] sm:$0xff]  ;;  %425 = vperm.xlu0 %2686, %v422_v6   ;;  %610 = vmatprep.mubr.bf16.mxu0 %v3208_v2 }
  0x83   : > { %700 = vperm.xlu1 %2687, %v696_v7   ;;  %v569_v8 = vld [vmem:[%s4634_s4] sm:$0x3]  ;;  %651 = vmatprep.mubr.bf16.mxu1 %v3208_v2 }
  0x84   : > { %716 = vmatprep.subr.bf16.mxu0 %v2688_v0  ;;  %759 = vmatprep.subr.bf16.mxu1 %v2690_v1  ;;  %v568_v10 = vld [vmem:[%s4635_s7] sm:$0x1] }
  0x85   : > { %v2694_v11 = vld [vmem:[%s4636_s28] sm:$0xff]  }
  0x86   : > { %572 = vperm.xlu0 %2686, %v569_v8  }
  0x87   : > { %705 = vperm.xlu1 %2687, %v697_v9  }
  0x88   : > { %2513 = vmatmul.mubr.msk.bf16.vlgmr.msra.gmra.mrb[4].mxu0 %vm448_vm0, %v568_v10  ;;  %2514 = vmatmul.mubr.msk.bf16.vlgmr.msra.gmra.mrb[4].mxu1 %vm448_vm0, %v568_v10 }
  0x89   : > { %717 = vmatpush1.bf16.msra.mxu0 %v2692_v3  ;;  %760 = vmatpush1.bf16.msra.mxu1 %v2693_v4 }
  0x8a   : > { %748 = vmatprep.mubr.bf16.mxu0 %v3208_v2  ;;  %791 = vmatprep.mubr.bf16.mxu1 %v3208_v2 }
  0x90   : > { %2519 = vmatmul.mubr.msk.bf16.vlgmr.msra.gmra.mrb[8].mxu0 %vm448_vm0, %v2694_v11  ;;  %2520 = vmatmul.mubr.msk.bf16.vlgmr.msra.gmra.mrb[8].mxu1 %vm448_vm0, %v2694_v11 }
 0x101   : > { %v426_v15 = vpop.permute.xlu0 %425 }
 0x102   : > { %v701_v36 = vpop.permute.xlu1 %700 }
 0x105   : > { %v573_v35 = vpop.permute.xlu0 %572 }
 0x106   : > { %v706_v54 = vpop.permute.xlu1 %705 }
 0x153   : > { %v486_v18 = vpop.f32.mrb[0].mxu0  ;;  %v527_v19 = vpop.f32.mrb[0].mxu1 }
 0x154   : > { %v487_v20 = vadd.f32 %v486_v18, %v426_v15  ;;  %v488_v21 = vpop.f32.mrb[1].mxu0  ;;  %v528_v22 = vadd.f32 %v527_v19, %v426_v15  ;;  %v529_v23 = vpop.f32.mrb[1].mxu1 }
 0x155   : > { %v489_v24 = vadd.f32 %v488_v21, %v426_v15  ;;  %v530_v26 = vadd.f32 %v529_v23, %v426_v15  ;;  %v490_v27 = vpop.f32.mrb[2].mxu0  ;;  %v531_v28 = vpop.f32.mrb[2].mxu1 }
 0x156   : > { %v491_v29 = vpop.f32.mrb[3].mxu0  ;;  %v532_v30 = vpop.f32.mrb[3].mxu1 }
 0x157   : > { %v2510_v31 = vpack.c.bf16 %v489_v24, %v487_v20  ;;  %v2511_v32 = vpack.c.bf16 %v530_v26, %v528_v22 }
 0x159   : > { %v550_v33 = vrot.slane %v2510_v31, %v549_v25  ;;  %v557_v34 = vrot.slane %v2511_v32, %v549_v25 }
 0x15b   : > { %v558_v37 = vcombine.low %v550_v33, %v557_v34  ;;  %v612_v38 = vpop.f32.mrb[4].mxu0  ;;  %v653_v39 = vpop.f32.mrb[4].mxu1 }
 0x15c   : > { %v613_v40 = vadd.f32 %v612_v38, %v573_v35  ;;  %v654_v41 = vadd.f32 %v653_v39, %v573_v35  ;;  %v614_v42 = vpop.f32.mrb[5].mxu0  ;;  %v655_v43 = vpop.f32.mrb[5].mxu1 }
 0x15d   : > { %2512 = vst.sshfl [vmem:[#allocation2] sm:$0x55 pattern:$0x73625140] %v558_v37  ;;  %v615_v44 = vadd.f32 %v614_v42, %v573_v35  ;;  %v656_v45 = vadd.f32 %v655_v43, %v573_v35  ;;  %v616_v46 = vpop.f32.mrb[6].mxu0  ;;  %v657_v47 = vpop.f32.mrb[6].mxu1 }
 0x15e   : > { %v617_v48 = vpop.f32.mrb[7].mxu0  ;;  %v658_v49 = vpop.f32.mrb[7].mxu1 }
 0x15f   : > { %v2515_v50 = vpack.c.bf16 %v615_v44, %v613_v40  ;;  %v2516_v51 = vpack.c.bf16 %v656_v45, %v654_v41 }
 0x161   : > { %v676_v52 = vrot.slane %v2515_v50, %v549_v25  ;;  %v683_v53 = vrot.slane %v2516_v51, %v549_v25 }
 0x163   : > { %v684_v55 = vcombine.low %v676_v52, %v683_v53  ;;  %v750_v56 = vpop.f32.mrb[8].mxu0  ;;  %v793_v57 = vpop.f32.mrb[8].mxu1 }
 0x164   : > { %v752_v58 = vpop.f32.mrb[9].mxu0  ;;  %v795_v59 = vpop.f32.mrb[9].mxu1  ;;  %v751_v62 = vadd.f32 %v750_v56, %v701_v36  ;;  %v794_v63 = vadd.f32 %v793_v57, %v701_v36 }
 0x165   : > { %2517 = vst.sshfl [vmem:[#allocation3] sm:$0x55 pattern:$0x73625140] %v684_v55  ;;  %v754_v60 = vpop.f32.mrb[10].mxu0  ;;  %v797_v61 = vpop.f32.mrb[10].mxu1  ;;  %v753_v4 = vadd.f32 %v752_v58, %v701_v36  ;;  %v796_v5 = vadd.f32 %v795_v59, %v701_v36 }
 0x166   : > { %v755_v0 = vadd.f32 %v754_v60, %v706_v54  ;;  %v798_v1 = vadd.f32 %v797_v61, %v706_v54  ;;  %v756_v2 = vpop.f32.mrb[11].mxu0  ;;  %v799_v3 = vpop.f32.mrb[11].mxu1 }
 0x167   : > { %v757_v6 = vadd.f32 %v756_v2, %v706_v54  ;;  %v800_v7 = vadd.f32 %v799_v3, %v706_v54 }
 0x168   : > { %v802_v8 = vpack.c.bf16 %v755_v0, %v751_v62  ;;  %v804_v9 = vpack.c.bf16 %v798_v1, %v794_v63 }
 0x169   : > { %v803_v10 = vpack.c.bf16 %v757_v6, %v753_v4  ;;  %v805_v11 = vpack.c.bf16 %v800_v7, %v796_v5 }
 0x16a   : > { %806 = vst [vmem:[#allocation4] sm:$0xff] %v802_v8  ;;  %808 = vst [vmem:[#allocation4 + $0x10] sm:$0xff] %v804_v9 }
 0x16b   : > { %807 = vst [vmem:[#allocation4 + $0x8] sm:$0xff] %v803_v10  ;;  %809 = vst [vmem:[#allocation4 + $0x18] sm:$0xff] %v805_v11 }
 0x16c PF: > { %s2521_s30 = sshll.u32 %s3185_s17, 8  ;;  %v828_v12 = vlaneseq  ;;  %v3210_v13 = vmov 1966171168   ;;  %v3211_v16 = vmov 0   ;;  %vm947_vm1 = vcmask 1040384   ;;  %s2204_s21 = sld [smem:[#allocation5]] }
 0x16d   : > { %s811_s0 = sshra.s32 %s2521_s30, 7  ;;  %v826_v14 = vunpack.c.l.s4 %v3210_v13  ;;  %v2523_v15 = vld.sshfl [vmem:[#allocation3] sm:$0x33 pattern:$0x75316420]  ;;  %992 = vmatprep.mubr.bf16.mxu0 %v3211_v16  ;;  %1185 = vmatprep.mubr.bf16.mxu1 %v3211_v16  ;;  %vm898_vm2 = vcmask 15360  }
 0x16e   : > { %v3545_v17 = vshrl.u32 %v828_v12, 7  ;;  %v881_v19 = vcombine.high %v2523_v15, %v2523_v15  ;;  %s813_s29 = scalar_lea.vmem [#allocation2], %s811_s0  ;;  %s4795_s22 = sld [smem:[#allocation16_spill]] }
 0x16f   : > { %v827_v18 = vunpack.c.0.s8 %v826_v14  ;;  %v2522_v20 = vld.sshfl [vmem:[%s813_s29] sm:$0x11 pattern:$0x75316420]  ;;  %s2559_s24 = sshll.u32 %s3185_s17, 1  ;;  %s4796_s6 = sld [smem:[#allocation19_spill]] }
 0x170   : > { %4637 = vst [vmem:[#allocation21_spill] sm:$0xff] %v3545_v17  ;;  %v824_v29 = vcombine.high %v2522_v20, %v2522_v20  ;;  %s2374_s8 = sshll.u32 %s3512_s3, 4  ;;  %s4797_s25 = sld [smem:[#allocation107_spill]]  ;;  %s4427_s8 = int_to_ptr.vmem [resolvable:$true] %s2374_s8 }
 0x171   : > { %v830_v21 = vsub.s32 %v827_v18, %v3545_v17  ;;  %s2359_s17 = scalar_lea.sflag [#allocation8], %s3502_s27  ;;  %s3075_s28 = scalar_lea.vmem %s4427_s8, 512 }
 0x172   : > { %p3076_p1 = scmp.ne.s32.totalorder %s4427_s8, %s3075_s28 }
 0x173   : > { %v831_v22 = vrot.slane %v2522_v20, %v830_v21  ;;  %v895_v23 = vrot.slane %v881_v19, %v830_v21  ;;  %v888_v24 = vrot.slane %v2523_v15, %v830_v21  ;;  %v838_v30 = vrot.slane %v824_v29, %v830_v21 }
 0x174   : > { %s2560_s9 = sshll.u32 %s4795_s22, 3 }
 0x175   : > { %841 = vxpose.xlu0.c.b16.start.end [1/1] (short) %v831_v22, 128  ;;  %2524 = vmatprep.subr.msk.bf16.mxu0 %vm947_vm1, %v895_v23  ;;  %v897_v25 = vcombine.high %v895_v23, %v895_v23  ;;  %v949_v26 = vsel %vm947_vm1, %v888_v24, 0  ;;  %v896_v27 = vcombine.high %v888_v24, %v888_v24  ;;  %s2371_s4 = sadd.s32 %s2560_s9, %s2559_s24  ;;  %p4798_p10 = scmp.ne.s32.totalorder %s4796_s6, 0 }
 0x176   : > { %961 = vmatpush1.bf16.msra.mxu0 %v949_v26  ;;  %s2561_s5 = sshll.u32 %s2371_s4, 7 }
 0x177   : > { %2541 = vmatprep.subr.msk.bf16.mxu1 %vm947_vm1, %v897_v25  ;;  %v955_v28 = vsel %vm947_vm1, %v896_v27, 0  ;;  %s4425_s10 = scalar_lea.hbm %s4797_s25, %s2561_s5  ;;  %p3077_p7 = pnand %p3076_p1, %p4798_p10 }
 0x178   : > { %1154 = vmatpush1.bf16.msra.mxu1 %v955_v28 }
 0x179   : > { %p3078_p13 = pneg %p3077_p7 }
 0x192   : > { %857 = vxpose.xlu0.c.b16.start.end [1/1] (short) %v838_v30, 128 }
 0x1db   : > { %v849_v31 = vpop.trf.xlu0 }
 0x1dc   : > { %2525 = vmatmul.mubr.msk.bf16.vlgmr.msra.gmra.mrb[0].mxu0 %vm898_vm2, %v849_v31  ;;  %2542 = vmatmul.mubr.msk.bf16.vlgmr.msra.gmra.mrb[0].mxu1 %vm898_vm2, %v849_v31 }
 0x1dd   : > { %1002 = vmatprep.mubr.bf16.mxu0 %v3211_v16  ;;  %1195 = vmatprep.mubr.bf16.mxu1 %v3211_v16 }
 0x1df   : > { %v850_v32 = vpop.trf.xlu0 }
 0x1e3   : > { %v851_v33 = vpop.trf.xlu0 }
 0x1e4   : > { %2526 = vmatmul.mubr.msk.bf16.gmra.mrb[4].mxu0 %vm898_vm2, %v850_v32  ;;  %2543 = vmatmul.mubr.msk.bf16.gmra.mrb[4].mxu1 %vm898_vm2, %v850_v32 }
 0x1e5   : > { %1012 = vmatprep.mubr.bf16.mxu0 %v3211_v16  ;;  %1205 = vmatprep.mubr.bf16.mxu1 %v3211_v16 }
 0x1e7   : > { %v852_v34 = vpop.trf.xlu0 }
 0x1eb   : > { %v853_v35 = vpop.trf.xlu0 }
 0x1ec   : > { %2527 = vmatmul.mubr.msk.bf16.gmra.mrb[8].mxu0 %vm898_vm2, %v851_v33  ;;  %2544 = vmatmul.mubr.msk.bf16.gmra.mrb[8].mxu1 %vm898_vm2, %v851_v33 }
 0x1ed   : > { %1022 = vmatprep.mubr.bf16.mxu0 %v3211_v16  ;;  %1215 = vmatprep.mubr.bf16.mxu1 %v3211_v16 }
 0x1ef   : > { %v854_v36 = vpop.trf.xlu0 }
 0x1f3   : > { %v855_v37 = vpop.trf.xlu0 }
 0x1f4   : > { %2528 = vmatmul.mubr.msk.bf16.gmra.mrb[12].mxu0 %vm898_vm2, %v852_v34  ;;  %2545 = vmatmul.mubr.msk.bf16.gmra.mrb[12].mxu1 %vm898_vm2, %v852_v34 }
 0x1f5   : > { %1032 = vmatprep.mubr.bf16.mxu0 %v3211_v16  ;;  %1225 = vmatprep.mubr.bf16.mxu1 %v3211_v16 }
 0x1f7   : > { %v856_v38 = vpop.trf.xlu0 }
 0x1fb   : > { %v865_v39 = vpop.trf.xlu0 }
 0x1fc   : > { %2529 = vmatmul.mubr.msk.bf16.gmra.mrb[16].mxu0 %vm898_vm2, %v853_v35  ;;  %2546 = vmatmul.mubr.msk.bf16.gmra.mrb[16].mxu1 %vm898_vm2, %v853_v35 }
 0x1fd   : > { %1042 = vmatprep.mubr.bf16.mxu0 %v3211_v16  ;;  %1235 = vmatprep.mubr.bf16.mxu1 %v3211_v16 }
 0x1ff   : > { %v866_v40 = vpop.trf.xlu0 }
 0x203   : > { %v867_v41 = vpop.trf.xlu0 }
 0x204   : > { %2530 = vmatmul.mubr.msk.bf16.gmra.mrb[20].mxu0 %vm898_vm2, %v854_v36  ;;  %2547 = vmatmul.mubr.msk.bf16.gmra.mrb[20].mxu1 %vm898_vm2, %v854_v36 }
 0x205   : > { %1052 = vmatprep.mubr.bf16.mxu0 %v3211_v16  ;;  %1245 = vmatprep.mubr.bf16.mxu1 %v3211_v16 }
 0x207   : > { %v868_v42 = vpop.trf.xlu0 }
 0x20b   : > { %v869_v43 = vpop.trf.xlu0 }
 0x20c   : > { %2531 = vmatmul.mubr.msk.bf16.gmra.mrb[24].mxu0 %vm898_vm2, %v855_v37  ;;  %2548 = vmatmul.mubr.msk.bf16.gmra.mrb[24].mxu1 %vm898_vm2, %v855_v37 }
 0x20d   : > { %1062 = vmatprep.mubr.bf16.mxu0 %v3211_v16  ;;  %1255 = vmatprep.mubr.bf16.mxu1 %v3211_v16 }
 0x20f   : > { %v870_v44 = vpop.trf.xlu0 }
 0x213   : > { %v871_v45 = vpop.trf.xlu0 }
 0x214   : > { %2532 = vmatmul.mubr.msk.bf16.gmra.mrb[28].mxu0 %vm898_vm2, %v856_v38  ;;  %2549 = vmatmul.mubr.msk.bf16.gmra.mrb[28].mxu1 %vm898_vm2, %v856_v38 }
 0x215   : > { %1072 = vmatprep.mubr.bf16.mxu0 %v3211_v16  ;;  %1265 = vmatprep.mubr.bf16.mxu1 %v3211_v16 }
 0x217   : > { %v872_v46 = vpop.trf.xlu0 }
 0x21c   : > { %2533 = vmatmul.mubr.msk.bf16.gmra.mrb[32].mxu0 %vm898_vm2, %v865_v39  ;;  %2550 = vmatmul.mubr.msk.bf16.gmra.mrb[32].mxu1 %vm898_vm2, %v865_v39 }
 0x21d   : > { %1082 = vmatprep.mubr.bf16.mxu0 %v3211_v16  ;;  %1275 = vmatprep.mubr.bf16.mxu1 %v3211_v16 }
 0x224   : > { %2534 = vmatmul.mubr.msk.bf16.gmra.mrb[36].mxu0 %vm898_vm2, %v866_v40  ;;  %2551 = vmatmul.mubr.msk.bf16.gmra.mrb[36].mxu1 %vm898_vm2, %v866_v40 }
 0x225   : > { %1092 = vmatprep.mubr.bf16.mxu0 %v3211_v16  ;;  %1285 = vmatprep.mubr.bf16.mxu1 %v3211_v16 }
 0x22c   : > { %2535 = vmatmul.mubr.msk.bf16.gmra.mrb[40].mxu0 %vm898_vm2, %v867_v41  ;;  %2552 = vmatmul.mubr.msk.bf16.gmra.mrb[40].mxu1 %vm898_vm2, %v867_v41 }
 0x22d   : > { %1102 = vmatprep.mubr.bf16.mxu0 %v3211_v16  ;;  %1295 = vmatprep.mubr.bf16.mxu1 %v3211_v16 }
 0x234   : > { %2536 = vmatmul.mubr.msk.bf16.gmra.mrb[44].mxu0 %vm898_vm2, %v868_v42  ;;  %2553 = vmatmul.mubr.msk.bf16.gmra.mrb[44].mxu1 %vm898_vm2, %v868_v42 }
 0x235   : > { %1112 = vmatprep.mubr.bf16.mxu0 %v3211_v16  ;;  %1305 = vmatprep.mubr.bf16.mxu1 %v3211_v16 }
 0x23c   : > { %2537 = vmatmul.mubr.msk.bf16.gmra.mrb[48].mxu0 %vm898_vm2, %v869_v43  ;;  %2554 = vmatmul.mubr.msk.bf16.gmra.mrb[48].mxu1 %vm898_vm2, %v869_v43 }
 0x23d   : > { %1122 = vmatprep.mubr.bf16.mxu0 %v3211_v16  ;;  %1315 = vmatprep.mubr.bf16.mxu1 %v3211_v16 }
 0x244   : > { %2538 = vmatmul.mubr.msk.bf16.gmra.mrb[52].mxu0 %vm898_vm2, %v870_v44  ;;  %2555 = vmatmul.mubr.msk.bf16.gmra.mrb[52].mxu1 %vm898_vm2, %v870_v44 }
 0x245   : > { %1132 = vmatprep.mubr.bf16.mxu0 %v3211_v16  ;;  %1325 = vmatprep.mubr.bf16.mxu1 %v3211_v16 }
 0x24c   : > { %2539 = vmatmul.mubr.msk.bf16.gmra.mrb[56].mxu0 %vm898_vm2, %v871_v45  ;;  %2556 = vmatmul.mubr.msk.bf16.gmra.mrb[56].mxu1 %vm898_vm2, %v871_v45 }
 0x24d   : > { %1142 = vmatprep.mubr.bf16.mxu0 %v3211_v16  ;;  %1335 = vmatprep.mubr.bf16.mxu1 %v3211_v16 }
 0x254   : > { %2540 = vmatmul.mubr.msk.bf16.gmra.mrb[60].mxu0 %vm898_vm2, %v872_v46  ;;  %2557 = vmatmul.mubr.msk.bf16.gmra.mrb[60].mxu1 %vm898_vm2, %v872_v46 }
 0x2af   : > { %v3610_v47 = vpop.f32.mrb[0].mxu0  ;;  %v3612_v48 = vpop.f32.mrb[0].mxu1 }
 0x2b0   : > { %v3614_v49 = vpop.f32.mrb[1].mxu0  ;;  %v3616_v50 = vpop.f32.mrb[1].mxu1 }
 0x2b1   : > { %v1346_v51 = vmax.f32 %v3610_v47, %v3614_v49  ;;  %v3620_v52 = vpop.f32.mrb[2].mxu0  ;;  %v3622_v53 = vpop.f32.mrb[2].mxu1 }
 0x2b2   : > { %v3624_v54 = vpop.f32.mrb[3].mxu0  ;;  %v3626_v55 = vpop.f32.mrb[3].mxu1 }
 0x2b3   : > { %v1351_v56 = vmax.f32 %v3620_v52, %v3624_v54  ;;  %v1347_v57 = vmax.f32 %v1346_v51, %v3612_v48 }
 0x2b5   : > { %v1348_v58 = vmax.f32 %v1347_v57, %v3616_v50  ;;  %v1352_v59 = vmax.f32 %v1351_v56, %v3622_v53 }
 0x2b7   : > { %1349 = vmax.xlane.f32.xlu1 %v1348_v58  ;;  %v3633_v60 = vpop.f32.mrb[4].mxu0  ;;  %v3635_v61 = vpop.f32.mrb[4].mxu1  ;;  %v1353_v62 = vmax.f32 %v1352_v59, %v3626_v55 }
 0x2b8   : > { %v3638_v63 = vpop.f32.mrb[5].mxu0  ;;  %v3640_v0 = vpop.f32.mrb[5].mxu1 }
 0x2b9   : > { %v1356_v1 = vmax.f32 %v3633_v60, %v3638_v63  ;;  %v3644_v2 = vpop.f32.mrb[6].mxu0  ;;  %v3646_v3 = vpop.f32.mrb[6].mxu1 }
 0x2ba   : > { %v3648_v4 = vpop.f32.mrb[7].mxu0  ;;  %v3650_v5 = vpop.f32.mrb[7].mxu1 }
 0x2bb   : > { %v1361_v6 = vmax.f32 %v3644_v2, %v3648_v4  ;;  %1354 = vmax.xlane.f32.xlu1 %v1353_v62  ;;  %v1357_v7 = vmax.f32 %v1356_v1, %v3635_v61 }
 0x2bd   : > { %v1358_v8 = vmax.f32 %v1357_v7, %v3640_v0  ;;  %v1362_v9 = vmax.f32 %v1361_v6, %v3646_v3 }
 0x2bf   : > { %1359 = vmax.xlane.f32.xlu1 %v1358_v8  ;;  %v3657_v10 = vpop.f32.mrb[8].mxu0  ;;  %v3659_v11 = vpop.f32.mrb[8].mxu1  ;;  %v1363_v12 = vmax.f32 %v1362_v9, %v3650_v5 }
 0x2c0   : > { %v3662_v13 = vpop.f32.mrb[9].mxu0  ;;  %v3664_v14 = vpop.f32.mrb[9].mxu1 }
 0x2c1   : > { %v1366_v15 = vmax.f32 %v3657_v10, %v3662_v13  ;;  %v3668_v16 = vpop.f32.mrb[10].mxu0  ;;  %v3670_v18 = vpop.f32.mrb[10].mxu1 }
 0x2c2   : > { %v3672_v19 = vpop.f32.mrb[11].mxu0  ;;  %v3674_v20 = vpop.f32.mrb[11].mxu1 }
 0x2c3   : > { %v1371_v21 = vmax.f32 %v3668_v16, %v3672_v19  ;;  %1364 = vmax.xlane.f32.xlu1 %v1363_v12  ;;  %v1367_v22 = vmax.f32 %v1366_v15, %v3659_v11 }
 0x2c5   : > { %v1368_v23 = vmax.f32 %v1367_v22, %v3664_v14  ;;  %v1372_v24 = vmax.f32 %v1371_v21, %v3670_v18 }
 0x2c7   : > { %1369 = vmax.xlane.f32.xlu1 %v1368_v23  ;;  %v3681_v25 = vpop.f32.mrb[12].mxu0  ;;  %v3683_v26 = vpop.f32.mrb[12].mxu1  ;;  %v1373_v27 = vmax.f32 %v1372_v24, %v3674_v20 }
 0x2c8   : > { %v3686_v28 = vpop.f32.mrb[13].mxu0  ;;  %v3688_v29 = vpop.f32.mrb[13].mxu1 }
 0x2c9   : > { %v1376_v30 = vmax.f32 %v3681_v25, %v3686_v28  ;;  %v3692_v31 = vpop.f32.mrb[14].mxu0  ;;  %v3694_v32 = vpop.f32.mrb[14].mxu1 }
 0x2ca   : > { %v3696_v33 = vpop.f32.mrb[15].mxu0  ;;  %v3698_v34 = vpop.f32.mrb[15].mxu1 }
 0x2cb   : > { %v1381_v35 = vmax.f32 %v3692_v31, %v3696_v33  ;;  %1374 = vmax.xlane.f32.xlu1 %v1373_v27  ;;  %v1377_v36 = vmax.f32 %v1376_v30, %v3683_v26 }
 0x2cd   : > { %v1378_v37 = vmax.f32 %v1377_v36, %v3688_v29  ;;  %v1382_v38 = vmax.f32 %v1381_v35, %v3694_v32 }
 0x2cf   : > { %1379 = vmax.xlane.f32.xlu1 %v1378_v37  ;;  %v3705_v39 = vpop.f32.mrb[16].mxu0  ;;  %v3707_v40 = vpop.f32.mrb[16].mxu1  ;;  %v1383_v41 = vmax.f32 %v1382_v38, %v3698_v34 }
 0x2d0   : > { %v3710_v42 = vpop.f32.mrb[17].mxu0  ;;  %v3712_v43 = vpop.f32.mrb[17].mxu1 }
 0x2d1   : > { %v1386_v44 = vmax.f32 %v3705_v39, %v3710_v42  ;;  %v3716_v45 = vpop.f32.mrb[18].mxu0  ;;  %v3718_v46 = vpop.f32.mrb[18].mxu1 }
 0x2d2   : > { %v3720_v51 = vpop.f32.mrb[19].mxu0  ;;  %v3722_v56 = vpop.f32.mrb[19].mxu1 }
 0x2d3   : > { %v1391_v57 = vmax.f32 %v3716_v45, %v3720_v51  ;;  %1384 = vmax.xlane.f32.xlu1 %v1383_v41  ;;  %v1387_v58 = vmax.f32 %v1386_v44, %v3707_v40 }
 0x2d5   : > { %v1388_v59 = vmax.f32 %v1387_v58, %v3712_v43  ;;  %v1392_v62 = vmax.f32 %v1391_v57, %v3718_v46 }
 0x2d7   : > { %1389 = vmax.xlane.f32.xlu1 %v1388_v59  ;;  %v3729_v1 = vpop.f32.mrb[20].mxu0  ;;  %v3731_v6 = vpop.f32.mrb[20].mxu1  ;;  %v1393_v7 = vmax.f32 %v1392_v62, %v3722_v56 }
 0x2d8   : > { %v3734_v8 = vpop.f32.mrb[21].mxu0  ;;  %v3736_v9 = vpop.f32.mrb[21].mxu1 }
 0x2d9   : > { %v1396_v12 = vmax.f32 %v3729_v1, %v3734_v8  ;;  %v3740_v15 = vpop.f32.mrb[22].mxu0  ;;  %v3742_v21 = vpop.f32.mrb[22].mxu1  ;;  %1394 = vmax.xlane.f32.xlu0 %v1393_v7 }
 0x2da   : > { %v3744_v22 = vpop.f32.mrb[23].mxu0  ;;  %v3746_v23 = vpop.f32.mrb[23].mxu1 }
 0x2db   : > { %4638 = vst [vmem:[#allocation22_spill] sm:$0xff] %v3746_v23  ;;  %v1401_v24 = vmax.f32 %v3740_v15, %v3744_v22  ;;  %v1397_v27 = vmax.f32 %v1396_v12, %v3731_v6 }
 0x2dd   : > { %v1398_v30 = vmax.f32 %v1397_v27, %v3736_v9  ;;  %v1402_v35 = vmax.f32 %v1401_v24, %v3742_v21 }
 0x2df   : > { %1399 = vmax.xlane.f32.xlu1 %v1398_v30  ;;  %v3753_v36 = vpop.f32.mrb[24].mxu0  ;;  %v3755_v37 = vpop.f32.mrb[24].mxu1  ;;  %v1403_v38 = vmax.f32 %v1402_v35, %v3746_v23 }
 0x2e0   : > { %4639 = vst [vmem:[#allocation23_spill] sm:$0xff] %v3753_v36  ;;  %4640 = vst [vmem:[#allocation24_spill] sm:$0xff] %v3755_v37  ;;  %v3758_v41 = vpop.f32.mrb[25].mxu0  ;;  %v3760_v44 = vpop.f32.mrb[25].mxu1 }
 0x2e1   : > { %4641 = vst [vmem:[#allocation25_spill] sm:$0xff] %v3758_v41  ;;  %4642 = vst [vmem:[#allocation26_spill] sm:$0xff] %v3760_v44  ;;  %v1406_v57 = vmax.f32 %v3753_v36, %v3758_v41  ;;  %v3764_v58 = vpop.f32.mrb[26].mxu0  ;;  %v3766_v59 = vpop.f32.mrb[26].mxu1 }
 0x2e2   : > { %4643 = vst [vmem:[#allocation27_spill] sm:$0xff] %v3764_v58  ;;  %4644 = vst [vmem:[#allocation28_spill] sm:$0xff] %v3766_v59  ;;  %v3768_v62 = vpop.f32.mrb[27].mxu0  ;;  %v3770_v7 = vpop.f32.mrb[27].mxu1 }
 0x2e3   : > { %4645 = vst [vmem:[#allocation29_spill] sm:$0xff] %v3768_v62  ;;  %4646 = vst [vmem:[#allocation30_spill] sm:$0xff] %v3770_v7  ;;  %v1411_v12 = vmax.f32 %v3764_v58, %v3768_v62  ;;  %1404 = vmax.xlane.f32.xlu1 %v1403_v38  ;;  %v1407_v24 = vmax.f32 %v1406_v57, %v3755_v37 }
 0x2e5   : > { %v1408_v27 = vmax.f32 %v1407_v24, %v3760_v44  ;;  %v1412_v30 = vmax.f32 %v1411_v12, %v3766_v59 }
 0x2e7   : > { %1409 = vmax.xlane.f32.xlu1 %v1408_v27  ;;  %v3777_v35 = vpop.f32.mrb[28].mxu0  ;;  %v3779_v17 = vpop.f32.mrb[28].mxu1  ;;  %v1413_v41 = vmax.f32 %v1412_v30, %v3770_v7 }
 0x2e8   : > { %4647 = vst [vmem:[#allocation31_spill] sm:$0xff] %v3777_v35  ;;  %4648 = vst [vmem:[#allocation32_spill] sm:$0xff] %v3779_v17  ;;  %v3782_v36 = vpop.f32.mrb[29].mxu0  ;;  %v3784_v23 = vpop.f32.mrb[29].mxu1 }
 0x2e9   : > { %4649 = vst [vmem:[#allocation33_spill] sm:$0xff] %v3782_v36  ;;  %4650 = vst [vmem:[#allocation34_spill] sm:$0xff] %v3784_v23  ;;  %v1416_v38 = vmax.f32 %v3777_v35, %v3782_v36  ;;  %v3788_v62 = vpop.f32.mrb[30].mxu0  ;;  %v3790_v57 = vpop.f32.mrb[30].mxu1 }
 0x2ea   : > { %4651 = vst [vmem:[#allocation35_spill] sm:$0xff] %v3788_v62  ;;  %4652 = vst [vmem:[#allocation36_spill] sm:$0xff] %v3790_v57  ;;  %v3792_v24 = vpop.f32.mrb[31].mxu0  ;;  %v3794_v12 = vpop.f32.mrb[31].mxu1 }
 0x2eb   : > { %4653 = vst [vmem:[#allocation37_spill] sm:$0xff] %v3792_v24  ;;  %4654 = vst [vmem:[#allocation38_spill] sm:$0xff] %v3794_v12  ;;  %v1421_v27 = vmax.f32 %v3788_v62, %v3792_v24  ;;  %1414 = vmax.xlane.f32.xlu1 %v1413_v41  ;;  %v1417_v30 = vmax.f32 %v1416_v38, %v3779_v17 }
 0x2ed   : > { %v1418_v7 = vmax.f32 %v1417_v30, %v3784_v23  ;;  %v1422_v59 = vmax.f32 %v1421_v27, %v3790_v57 }
 0x2ef   : > { %1419 = vmax.xlane.f32.xlu1 %v1418_v7  ;;  %v3801_v36 = vpop.f32.mrb[32].mxu0  ;;  %v3803_v35 = vpop.f32.mrb[32].mxu1  ;;  %v1423_v58 = vmax.f32 %v1422_v59, %v3794_v12 }
 0x2f0   : > { %4655 = vst [vmem:[#allocation39_spill] sm:$0xff] %v3801_v36  ;;  %4656 = vst [vmem:[#allocation40_spill] sm:$0xff] %v3803_v35  ;;  %v3806_v44 = vpop.f32.mrb[33].mxu0  ;;  %v3808_v37 = vpop.f32.mrb[33].mxu1 }
 0x2f1   : > { %4657 = vst [vmem:[#allocation41_spill] sm:$0xff] %v3806_v44  ;;  %4658 = vst [vmem:[#allocation42_spill] sm:$0xff] %v3808_v37  ;;  %v1426_v41 = vmax.f32 %v3801_v36, %v3806_v44  ;;  %v3812_v24 = vpop.f32.mrb[34].mxu0  ;;  %v3814_v38 = vpop.f32.mrb[34].mxu1 }
 0x2f2   : > { %4659 = vst [vmem:[#allocation43_spill] sm:$0xff] %v3812_v24  ;;  %4660 = vst [vmem:[#allocation44_spill] sm:$0xff] %v3814_v38  ;;  %v3816_v30 = vpop.f32.mrb[35].mxu0  ;;  %v3818_v7 = vpop.f32.mrb[35].mxu1 }
 0x2f3   : > { %4661 = vst [vmem:[#allocation45_spill] sm:$0xff] %v3816_v30  ;;  %4662 = vst [vmem:[#allocation46_spill] sm:$0xff] %v3818_v7  ;;  %v1431_v27 = vmax.f32 %v3812_v24, %v3816_v30  ;;  %1424 = vmax.xlane.f32.xlu1 %v1423_v58  ;;  %v1427_v59 = vmax.f32 %v1426_v41, %v3803_v35 }
 0x2f5   : > { %v1428_v12 = vmax.f32 %v1427_v59, %v3808_v37  ;;  %v1432_v57 = vmax.f32 %v1431_v27, %v3814_v38 }
 0x2f7   : > { %1429 = vmax.xlane.f32.xlu1 %v1428_v12  ;;  %v3825_v44 = vpop.f32.mrb[36].mxu0  ;;  %v3827_v36 = vpop.f32.mrb[36].mxu1  ;;  %v1433_v62 = vmax.f32 %v1432_v57, %v3818_v7 }
 0x2f8   : > { %4663 = vst [vmem:[#allocation47_spill] sm:$0xff] %v3825_v44  ;;  %4664 = vst [vmem:[#allocation48_spill] sm:$0xff] %v3827_v36  ;;  %v3830_v23 = vpop.f32.mrb[37].mxu0  ;;  %v3832_v17 = vpop.f32.mrb[37].mxu1 }
 0x2f9   : > { %4665 = vst [vmem:[#allocation49_spill] sm:$0xff] %v3830_v23  ;;  %4666 = vst [vmem:[#allocation50_spill] sm:$0xff] %v3832_v17  ;;  %v1436_v58 = vmax.f32 %v3825_v44, %v3830_v23  ;;  %v3836_v30 = vpop.f32.mrb[38].mxu0  ;;  %v3838_v41 = vpop.f32.mrb[38].mxu1 }
 0x2fa   : > { %4667 = vst [vmem:[#allocation51_spill] sm:$0xff] %v3836_v30  ;;  %4668 = vst [vmem:[#allocation52_spill] sm:$0xff] %v3838_v41  ;;  %v3840_v59 = vpop.f32.mrb[39].mxu0  ;;  %v3842_v12 = vpop.f32.mrb[39].mxu1 }
 0x2fb   : > { %4669 = vst [vmem:[#allocation53_spill] sm:$0xff] %v3840_v59  ;;  %4670 = vst [vmem:[#allocation54_spill] sm:$0xff] %v3842_v12  ;;  %v1441_v27 = vmax.f32 %v3836_v30, %v3840_v59  ;;  %1434 = vmax.xlane.f32.xlu1 %v1433_v62  ;;  %v1437_v57 = vmax.f32 %v1436_v58, %v3827_v36 }
 0x2fd   : > { %v1438_v7 = vmax.f32 %v1437_v57, %v3832_v17  ;;  %v1442_v38 = vmax.f32 %v1441_v27, %v3838_v41 }
 0x2ff   : > { %1439 = vmax.xlane.f32.xlu1 %v1438_v7  ;;  %v3849_v23 = vpop.f32.mrb[40].mxu0  ;;  %v3851_v44 = vpop.f32.mrb[40].mxu1  ;;  %v1443_v24 = vmax.f32 %v1442_v38, %v3842_v12 }
 0x300   : > { %4671 = vst [vmem:[#allocation55_spill] sm:$0xff] %v3849_v23  ;;  %4672 = vst [vmem:[#allocation56_spill] sm:$0xff] %v3851_v44  ;;  %v3854_v37 = vpop.f32.mrb[41].mxu0  ;;  %v3856_v35 = vpop.f32.mrb[41].mxu1 }
 0x301   : > { %4673 = vst [vmem:[#allocation57_spill] sm:$0xff] %v3854_v37  ;;  %4674 = vst [vmem:[#allocation58_spill] sm:$0xff] %v3856_v35  ;;  %v1446_v62 = vmax.f32 %v3849_v23, %v3854_v37  ;;  %v3860_v59 = vpop.f32.mrb[42].mxu0  ;;  %v3862_v58 = vpop.f32.mrb[42].mxu1 }
 0x302   : > { %4675 = vst [vmem:[#allocation59_spill] sm:$0xff] %v3860_v59  ;;  %4676 = vst [vmem:[#allocation60_spill] sm:$0xff] %v3862_v58  ;;  %v3864_v57 = vpop.f32.mrb[43].mxu0  ;;  %v3866_v7 = vpop.f32.mrb[43].mxu1 }
 0x303   : > { %4677 = vst [vmem:[#allocation61_spill] sm:$0xff] %v3864_v57  ;;  %4678 = vst [vmem:[#allocation62_spill] sm:$0xff] %v3866_v7  ;;  %v1451_v27 = vmax.f32 %v3860_v59, %v3864_v57  ;;  %1444 = vmax.xlane.f32.xlu1 %v1443_v24  ;;  %v1447_v38 = vmax.f32 %v1446_v62, %v3851_v44 }
 0x305   : > { %v1448_v12 = vmax.f32 %v1447_v38, %v3856_v35  ;;  %v1452_v41 = vmax.f32 %v1451_v27, %v3862_v58 }
 0x307   : > { %1449 = vmax.xlane.f32.xlu0 %v1448_v12  ;;  %v3873_v37 = vpop.f32.mrb[44].mxu0  ;;  %v3875_v23 = vpop.f32.mrb[44].mxu1  ;;  %v1453_v30 = vmax.f32 %v1452_v41, %v3866_v7 }
 0x308   : > { %4679 = vst [vmem:[#allocation63_spill] sm:$0xff] %v3873_v37  ;;  %4680 = vst [vmem:[#allocation64_spill] sm:$0xff] %v3875_v23  ;;  %v3878_v17 = vpop.f32.mrb[45].mxu0  ;;  %v3880_v36 = vpop.f32.mrb[45].mxu1 }
 0x309   : > { %4681 = vst [vmem:[#allocation65_spill] sm:$0xff] %v3878_v17  ;;  %4682 = vst [vmem:[#allocation66_spill] sm:$0xff] %v3880_v36  ;;  %v1456_v24 = vmax.f32 %v3873_v37, %v3878_v17  ;;  %1454 = vmax.xlane.f32.xlu1 %v1453_v30  ;;  %v3884_v62 = vpop.f32.mrb[46].mxu0  ;;  %v3886_v38 = vpop.f32.mrb[46].mxu1 }
 0x30a   : > { %4683 = vst [vmem:[#allocation67_spill] sm:$0xff] %v3884_v62  ;;  %4684 = vst [vmem:[#allocation68_spill] sm:$0xff] %v3886_v38  ;;  %v3888_v27 = vpop.f32.mrb[47].mxu0  ;;  %v3890_v12 = vpop.f32.mrb[47].mxu1 }
 0x30b   : > { %4685 = vst [vmem:[#allocation69_spill] sm:$0xff] %v3888_v27  ;;  %4686 = vst [vmem:[#allocation70_spill] sm:$0xff] %v3890_v12  ;;  %v1461_v58 = vmax.f32 %v3884_v62, %v3888_v27  ;;  %v1457_v41 = vmax.f32 %v1456_v24, %v3875_v23 }
 0x30d   : > { %v1458_v7 = vmax.f32 %v1457_v41, %v3880_v36  ;;  %v1462_v57 = vmax.f32 %v1461_v58, %v3886_v38 }
 0x30f   : > { %1459 = vmax.xlane.f32.xlu0 %v1458_v7  ;;  %v3897_v17 = vpop.f32.mrb[48].mxu0  ;;  %v3899_v30 = vpop.f32.mrb[48].mxu1  ;;  %v1463_v37 = vmax.f32 %v1462_v57, %v3890_v12 }
 0x310   : > { %4687 = vst [vmem:[#allocation71_spill] sm:$0xff] %v3897_v17  ;;  %4688 = vst [vmem:[#allocation72_spill] sm:$0xff] %v3899_v30  ;;  %v3902_v59 = vpop.f32.mrb[49].mxu0  ;;  %v3904_v35 = vpop.f32.mrb[49].mxu1 }
 0x311   : > { %4689 = vst [vmem:[#allocation73_spill] sm:$0xff] %v3902_v59  ;;  %4690 = vst [vmem:[#allocation74_spill] sm:$0xff] %v3904_v35  ;;  %v1466_v27 = vmax.f32 %v3897_v17, %v3902_v59  ;;  %1464 = vmax.xlane.f32.xlu1 %v1463_v37  ;;  %v3908_v24 = vpop.f32.mrb[50].mxu0  ;;  %v3910_v41 = vpop.f32.mrb[50].mxu1 }
 0x312   : > { %4691 = vst [vmem:[#allocation75_spill] sm:$0xff] %v3908_v24  ;;  %4692 = vst [vmem:[#allocation76_spill] sm:$0xff] %v3910_v41  ;;  %v3912_v58 = vpop.f32.mrb[51].mxu0  ;;  %v3914_v7 = vpop.f32.mrb[51].mxu1 }
 0x313   : > { %4693 = vst [vmem:[#allocation77_spill] sm:$0xff] %v3912_v58  ;;  %4694 = vst [vmem:[#allocation78_spill] sm:$0xff] %v3914_v7  ;;  %v1471_v38 = vmax.f32 %v3908_v24, %v3912_v58  ;;  %v1467_v57 = vmax.f32 %v1466_v27, %v3899_v30 }
 0x315   : > { %v1468_v12 = vmax.f32 %v1467_v57, %v3904_v35  ;;  %v1472_v62 = vmax.f32 %v1471_v38, %v3910_v41 }
 0x317   : > { %1469 = vmax.xlane.f32.xlu0 %v1468_v12  ;;  %v3921_v59 = vpop.f32.mrb[52].mxu0  ;;  %v3923_v37 = vpop.f32.mrb[52].mxu1  ;;  %v1473_v17 = vmax.f32 %v1472_v62, %v3914_v7 }
 0x318   : > { %4695 = vst [vmem:[#allocation79_spill] sm:$0xff] %v3921_v59  ;;  %4696 = vst [vmem:[#allocation80_spill] sm:$0xff] %v3923_v37  ;;  %v3926_v36 = vpop.f32.mrb[53].mxu0  ;;  %v3928_v23 = vpop.f32.mrb[53].mxu1 }
 0x319   : > { %4697 = vst [vmem:[#allocation81_spill] sm:$0xff] %v3926_v36  ;;  %4698 = vst [vmem:[#allocation82_spill] sm:$0xff] %v3928_v23  ;;  %v1476_v58 = vmax.f32 %v3921_v59, %v3926_v36  ;;  %1474 = vmax.xlane.f32.xlu1 %v1473_v17  ;;  %v3932_v27 = vpop.f32.mrb[54].mxu0  ;;  %v3934_v57 = vpop.f32.mrb[54].mxu1 }
 0x31a   : > { %4699 = vst [vmem:[#allocation83_spill] sm:$0xff] %v3932_v27  ;;  %4700 = vst [vmem:[#allocation84_spill] sm:$0xff] %v3934_v57  ;;  %v3936_v38 = vpop.f32.mrb[55].mxu0  ;;  %v3938_v12 = vpop.f32.mrb[55].mxu1 }
 0x31b   : > { %4701 = vst [vmem:[#allocation85_spill] sm:$0xff] %v3936_v38  ;;  %4702 = vst [vmem:[#allocation86_spill] sm:$0xff] %v3938_v12  ;;  %v1481_v41 = vmax.f32 %v3932_v27, %v3936_v38  ;;  %v1477_v62 = vmax.f32 %v1476_v58, %v3923_v37 }
 0x31d   : > { %v1478_v7 = vmax.f32 %v1477_v62, %v3928_v23  ;;  %v1482_v24 = vmax.f32 %v1481_v41, %v3934_v57 }
 0x31f   : > { %1479 = vmax.xlane.f32.xlu0 %v1478_v7  ;;  %v3945_v36 = vpop.f32.mrb[56].mxu0  ;;  %v3947_v17 = vpop.f32.mrb[56].mxu1  ;;  %v1483_v59 = vmax.f32 %v1482_v24, %v3938_v12 }
 0x320   : > { %4703 = vst [vmem:[#allocation87_spill] sm:$0xff] %v3945_v36  ;;  %4704 = vst [vmem:[#allocation88_spill] sm:$0xff] %v3947_v17  ;;  %v3950_v35 = vpop.f32.mrb[57].mxu0  ;;  %v3952_v30 = vpop.f32.mrb[57].mxu1 }
 0x321   : > { %4705 = vst [vmem:[#allocation89_spill] sm:$0xff] %v3950_v35  ;;  %4706 = vst [vmem:[#allocation90_spill] sm:$0xff] %v3952_v30  ;;  %v1486_v38 = vmax.f32 %v3945_v36, %v3950_v35  ;;  %1484 = vmax.xlane.f32.xlu1 %v1483_v59  ;;  %v3956_v58 = vpop.f32.mrb[58].mxu0  ;;  %v3958_v62 = vpop.f32.mrb[58].mxu1 }
 0x322   : > { %4707 = vst [vmem:[#allocation91_spill] sm:$0xff] %v3956_v58  ;;  %4708 = vst [vmem:[#allocation92_spill] sm:$0xff] %v3958_v62  ;;  %v3960_v41 = vpop.f32.mrb[59].mxu0  ;;  %v3962_v7 = vpop.f32.mrb[59].mxu1 }
 0x323   : > { %4709 = vst [vmem:[#allocation93_spill] sm:$0xff] %v3960_v41  ;;  %4710 = vst [vmem:[#allocation94_spill] sm:$0xff] %v3962_v7  ;;  %v1491_v57 = vmax.f32 %v3956_v58, %v3960_v41  ;;  %v1487_v24 = vmax.f32 %v1486_v38, %v3947_v17 }
 0x325   : > { %v1488_v12 = vmax.f32 %v1487_v24, %v3952_v30  ;;  %v1492_v27 = vmax.f32 %v1491_v57, %v3958_v62 }
 0x327   : > { %1489 = vmax.xlane.f32.xlu0 %v1488_v12  ;;  %v3969_v35 = vpop.f32.mrb[60].mxu0  ;;  %v3971_v59 = vpop.f32.mrb[60].mxu1  ;;  %v1493_v36 = vmax.f32 %v1492_v27, %v3962_v7 }
 0x328   : > { %4711 = vst [vmem:[#allocation95_spill] sm:$0xff] %v3969_v35  ;;  %4712 = vst [vmem:[#allocation96_spill] sm:$0xff] %v3971_v59  ;;  %v3974_v23 = vpop.f32.mrb[61].mxu0  ;;  %v3976_v37 = vpop.f32.mrb[61].mxu1 }
 0x329   : > { %4713 = vst [vmem:[#allocation97_spill] sm:$0xff] %v3974_v23  ;;  %v1496_v41 = vmax.f32 %v3969_v35, %v3974_v23  ;;  %1494 = vmax.xlane.f32.xlu1 %v1493_v36  ;;  %v3980_v38 = vpop.f32.mrb[62].mxu0  ;;  %v3982_v24 = vpop.f32.mrb[62].mxu1 }
 0x32a   : > { %4714 = vst [vmem:[#allocation98_spill] sm:$0xff] %v3980_v38  ;;  %v3984_v57 = vpop.f32.mrb[63].mxu0  ;;  %v3986_v12 = vpop.f32.mrb[63].mxu1 }
 0x32b   : > { %4715 = vst [vmem:[#allocation99_spill] sm:$0xff] %v3984_v57  ;;  %v1501_v62 = vmax.f32 %v3980_v38, %v3984_v57  ;;  %v1497_v27 = vmax.f32 %v1496_v41, %v3971_v59 }
 0x32d   : > { %v1498_v7 = vmax.f32 %v1497_v27, %v3976_v37  ;;  %v1502_v58 = vmax.f32 %v1501_v62, %v3982_v24 }
 0x32f   : > { %1499 = vmax.xlane.f32.xlu0 %v1498_v7  ;;  %v1503_v36 = vmax.f32 %v1502_v58, %v3986_v12 }
 0x331   : > { %1504 = vmax.xlane.f32.xlu1 %v1503_v36 }
 0x344   : > { %v1350_v23 = vpop.xlane.xlu1 %1349 }
 0x345   : > { %v1506_v35 = vsub.f32 %v3610_v47, %v1350_v23  ;;  %v1507_v30 = vsub.f32 %v3614_v49, %v1350_v23  ;;  %v1508_v17 = vsub.f32 %v3612_v48, %v1350_v23  ;;  %v1509_v44 = vsub.f32 %v3616_v50, %v1350_v23 }
 0x347   : > { %v1634_v57 = vmul.f32 1.442695, %v1506_v35  ;;  %v1636_v38 = vmul.f32 1.442695, %v1507_v30  ;;  %v1638_v41 = vmul.f32 1.442695, %v1508_v17 }
 0x348   : > { %v1640_v59 = vmul.f32 1.442695, %v1509_v44  ;;  %v1355_v27 = vpop.xlane.xlu1 %1354 }
 0x349   : > { %2695 = vpow2.f32 %v1634_v57  ;;  %v1510_v62 = vsub.f32 %v3620_v52, %v1355_v27  ;;  %v1511_v58 = vsub.f32 %v3624_v54, %v1355_v27  ;;  %v1512_v7 = vsub.f32 %v3622_v53, %v1355_v27 }
 0x34a   : > { %2697 = vpow2.f32 %v1636_v38  ;;  %v1513_v47 = vsub.f32 %v3626_v55, %v1355_v27 }
 0x34b   : > { %2699 = vpow2.f32 %v1638_v41  ;;  %v1642_v49 = vmul.f32 1.442695, %v1510_v62  ;;  %v1644_v48 = vmul.f32 1.442695, %v1511_v58  ;;  %v1646_v36 = vmul.f32 1.442695, %v1512_v7 }
 0x34c   : > { %2701 = vpow2.f32 %v1640_v59  ;;  %v1648_v50 = vmul.f32 1.442695, %v1513_v47  ;;  %v1360_v23 = vpop.xlane.xlu1 %1359 }
 0x34d   : > { %2703 = vpow2.f32 %v1642_v49  ;;  %v1514_v44 = vsub.f32 %v3633_v60, %v1360_v23  ;;  %v1515_v35 = vsub.f32 %v3638_v63, %v1360_v23  ;;  %v1516_v52 = vsub.f32 %v3635_v61, %v1360_v23 }
 0x34e   : > { %2705 = vpow2.f32 %v1644_v48  ;;  %v1517_v53 = vsub.f32 %v3640_v0, %v1360_v23 }
 0x34f   : > { %2707 = vpow2.f32 %v1646_v36  ;;  %v1650_v54 = vmul.f32 1.442695, %v1514_v44  ;;  %v1652_v55 = vmul.f32 1.442695, %v1515_v35  ;;  %v1654_v30 = vmul.f32 1.442695, %v1516_v52 }
 0x350   : > { %2709 = vpow2.f32 %v1648_v50  ;;  %v1656_v17 = vmul.f32 1.442695, %v1517_v53  ;;  %v1365_v38 = vpop.xlane.xlu1 %1364 }
 0x351   : > { %2711 = vpow2.f32 %v1650_v54  ;;  %v1518_v59 = vsub.f32 %v3644_v2, %v1365_v38  ;;  %v1519_v57 = vsub.f32 %v3648_v4, %v1365_v38  ;;  %v1520_v60 = vsub.f32 %v3646_v3, %v1365_v38 }
 0x352   : > { %2713 = vpow2.f32 %v1652_v55  ;;  %v1521_v61 = vsub.f32 %v3650_v5, %v1365_v38 }
 0x353   : > { %v2696_v63 = vpop.eup %2695  ;;  %2715 = vpow2.f32 %v1654_v30  ;;  %v1658_v0 = vmul.f32 1.442695, %v1518_v59  ;;  %v1660_v41 = vmul.f32 1.442695, %v1519_v57  ;;  %v1662_v27 = vmul.f32 1.442695, %v1520_v60 }
 0x354   : > { %v2698_v62 = vpop.eup %2697  ;;  %2717 = vpow2.f32 %v1656_v17  ;;  %v1664_v58 = vmul.f32 1.442695, %v1521_v61  ;;  %v1370_v7 = vpop.xlane.xlu1 %1369 }
 0x355   : > { %v2700_v47 = vpop.eup %2699  ;;  %2719 = vpow2.f32 %v1658_v0  ;;  %v1522_v2 = vsub.f32 %v3657_v10, %v1370_v7  ;;  %v1523_v4 = vsub.f32 %v3662_v13, %v1370_v7  ;;  %v1524_v3 = vsub.f32 %v3659_v11, %v1370_v7 }
 0x356   : > { %v2702_v49 = vpop.eup %2701  ;;  %2721 = vpow2.f32 %v1660_v41  ;;  %v1525_v5 = vsub.f32 %v3664_v14, %v1370_v7  ;;  %v1890_v48 = vadd.f32 %v2698_v62, %v2696_v63 }
 0x357   : > { %v2704_v36 = vpop.eup %2703  ;;  %2723 = vpow2.f32 %v1662_v27  ;;  %v1666_v50 = vmul.f32 1.442695, %v1522_v2  ;;  %v1668_v23 = vmul.f32 1.442695, %v1523_v4  ;;  %v1670_v44 = vmul.f32 1.442695, %v1524_v3 }
 0x358   : > { %v2706_v35 = vpop.eup %2705  ;;  %2725 = vpow2.f32 %v1664_v58  ;;  %v1672_v52 = vmul.f32 1.442695, %v1525_v5  ;;  %v1375_v53 = vpop.xlane.xlu1 %1374  ;;  %v1891_v54 = vadd.f32 %v2700_v47, %v1890_v48  ;;  %v2050_v10 = vpack.c.bf16 %v2704_v36, %v2696_v63 }
 0x359   : > { %v2708_v55 = vpop.eup %2707  ;;  %2727 = vpow2.f32 %v1666_v50  ;;  %v1526_v11 = vsub.f32 %v3668_v16, %v1375_v53  ;;  %v1527_v13 = vsub.f32 %v3672_v19, %v1375_v53  ;;  %v1528_v14 = vsub.f32 %v3670_v18, %v1375_v53 }
 0x35a   : > { %v2710_v30 = vpop.eup %2709  ;;  %2729 = vpow2.f32 %v1668_v23  ;;  %v1529_v17 = vsub.f32 %v3674_v20, %v1375_v53  ;;  %v2051_v38 = vpack.c.bf16 %v2706_v35, %v2698_v62  ;;  %v1892_v59 = vadd.f32 %v2702_v49, %v1891_v54 }
 0x35b   : > { %v4018_v57 = vpop.eup %2711  ;;  %2731 = vpow2.f32 %v1670_v44  ;;  %v1674_v60 = vmul.f32 1.442695, %v1526_v11  ;;  %v1676_v61 = vmul.f32 1.442695, %v1527_v13  ;;  %v1678_v63 = vmul.f32 1.442695, %v1528_v14 }
 0x35c   : > { %v2714_v0 = vpop.eup %2713  ;;  %2733 = vpow2.f32 %v1672_v52  ;;  %v1680_v41 = vmul.f32 1.442695, %v1529_v17  ;;  %2118 = vmatprep.subr.bf16.mxu1 %v2051_v38  ;;  %v2053_v16 = vpack.c.bf16 %v2710_v30, %v2702_v49  ;;  %1893 = vadd.xlane.f32.xlu0 %v1892_v59  ;;  %v2052_v19 = vpack.c.bf16 %v2708_v55, %v2700_v47  ;;  %v1380_v18 = vpop.xlane.xlu1 %1379 }
 0x35d   : > { %v4020_v27 = vpop.eup %2715  ;;  %2735 = vpow2.f32 %v1674_v60  ;;  %2119 = vmatpush1.bf16.xpose.msra.mxu1 %v2050_v10  ;;  %v1530_v20 = vsub.f32 %v3681_v25, %v1380_v18  ;;  %v1531_v62 = vsub.f32 %v3686_v28, %v1380_v18  ;;  %v1532_v58 = vsub.f32 %v3683_v26, %v1380_v18 }
 0x35e   : > { %v2718_v7 = vpop.eup %2717  ;;  %2737 = vpow2.f32 %v1676_v61  ;;  %2161 = vmatprep.subr.bf16.mxu0 %v2053_v16  ;;  %v1533_v2 = vsub.f32 %v3688_v29, %v1380_v18  ;;  %v1895_v4 = vadd.f32 %v2706_v35, %v2704_v36  ;;  %v1900_v3 = vadd.f32 %v2714_v0, %v4018_v57  ;;  %v2115_v61 = vld [vmem:[#allocation4 + $0x8] sm:$0xff] }
 0x35f   : > { %v2720_v47 = vpop.eup %2719  ;;  %2739 = vpow2.f32 %v1678_v63  ;;  %2162 = vmatpush1.bf16.xpose.msra.mxu0 %v2052_v19  ;;  %v1682_v49 = vmul.f32 1.442695, %v1530_v20  ;;  %v1684_v5 = vmul.f32 1.442695, %v1531_v62  ;;  %v1686_v48 = vmul.f32 1.442695, %v1532_v58  ;;  %2150 = vmatprep.mubr.bf16.mxu1 %v2115_v61 }
 0x360   : > { %v2722_v50 = vpop.eup %2721  ;;  %2741 = vpow2.f32 %v1680_v41  ;;  %v1688_v25 = vmul.f32 1.442695, %v1533_v2  ;;  %v1896_v28 = vadd.f32 %v2708_v55, %v1895_v4  ;;  %v1385_v23 = vpop.xlane.xlu1 %1384  ;;  %v1901_v26 = vadd.f32 %v4020_v27, %v1900_v3  ;;  %v2117_v63 = vld [vmem:[#allocation4 + $0x18] sm:$0xff] }
 0x361   : > { %v2724_v44 = vpop.eup %2723  ;;  %2743 = vpow2.f32 %v1682_v49  ;;  %v1534_v29 = vsub.f32 %v3692_v31, %v1385_v23  ;;  %v1535_v36 = vsub.f32 %v3696_v33, %v1385_v23  ;;  %v1536_v35 = vsub.f32 %v3694_v32, %v1385_v23  ;;  %2193 = vmatprep.mubr.bf16.mxu0 %v2117_v63 }
 0x362   : > { %v2726_v52 = vpop.eup %2725  ;;  %2745 = vpow2.f32 %v1684_v5  ;;  %v1897_v53 = vadd.f32 %v2710_v30, %v1896_v28  ;;  %v1537_v54 = vsub.f32 %v3698_v34, %v1385_v23  ;;  %v2055_v10 = vpack.c.bf16 %v2722_v50, %v2714_v0 }
 0x363   : > { %v4032_v11 = vpop.eup %2727  ;;  %2747 = vpow2.f32 %v1686_v48  ;;  %v1690_v55 = vmul.f32 1.442695, %v1534_v29  ;;  %v1692_v13 = vmul.f32 1.442695, %v1535_v36  ;;  %v1694_v14 = vmul.f32 1.442695, %v1536_v35 }
 0x364   : > { %v2730_v17 = vpop.eup %2729  ;;  %2749 = vpow2.f32 %v1688_v25  ;;  %1898 = vadd.xlane.f32.xlu0 %v1897_v53  ;;  %v1696_v31 = vmul.f32 1.442695, %v1537_v54  ;;  %2120 = vmatprep.subr.bf16.mxu1 %v2055_v10  ;;  %v2057_v33 = vpack.c.bf16 %v2726_v52, %v2718_v7  ;;  %v1902_v38 = vadd.f32 %v2718_v7, %v1901_v26  ;;  %v1390_v32 = vpop.xlane.xlu1 %1389 }
 0x365   : > { %v4034_v59 = vpop.eup %2731  ;;  %2751 = vpow2.f32 %v1690_v55  ;;  %v2054_v34 = vpack.c.bf16 %v2720_v47, %v4018_v57  ;;  %v2056_v30 = vpack.c.bf16 %v2724_v44, %v4020_v27  ;;  %v1538_v60 = vsub.f32 %v3705_v39, %v1390_v32 }
 0x366   : > { %v4039_v0 = vpop.eup %2733  ;;  %2753 = vpow2.f32 %v1692_v13  ;;  %2163 = vmatprep.subr.bf16.mxu0 %v2057_v33  ;;  %v1539_v41 = vsub.f32 %v3710_v42, %v1390_v32  ;;  %v1540_v16 = vsub.f32 %v3707_v40, %v1390_v32  ;;  %v1541_v19 = vsub.f32 %v3712_v43, %v1390_v32  ;;  %v1395_v18 = vpop.xlane.xlu0 %1394 }
 0x367   : > { %v2736_v20 = vpop.eup %2735  ;;  %2755 = vpow2.f32 %v1694_v14  ;;  %2121 = vmatpush1.bf16.xpose.msra.mxu1 %v2054_v34  ;;  %2164 = vmatpush1.bf16.xpose.msra.mxu0 %v2056_v30  ;;  %v1698_v57 = vmul.f32 1.442695, %v1538_v60  ;;  %v1905_v39 = vadd.f32 %v2722_v50, %v2720_v47  ;;  %v1542_v27 = vsub.f32 %v3716_v45, %v1395_v18  ;;  %v4716_v30 = vld [vmem:[#allocation22_spill] sm:$0xff] }
 0x368   : > { %v2738_v62 = vpop.eup %2737  ;;  %2757 = vpow2.f32 %v1696_v31  ;;  %1903 = vadd.xlane.f32.xlu0 %v1902_v38  ;;  %v1700_v58 = vmul.f32 1.442695, %v1539_v41  ;;  %v1702_v7 = vmul.f32 1.442695, %v1540_v16  ;;  %v1704_v42 = vmul.f32 1.442695, %v1541_v19 }
 0x369   : > { %v2740_v40 = vpop.eup %2739  ;;  %2759 = vpow2.f32 %v1698_v57  ;;  %v1906_v43 = vadd.f32 %v2724_v44, %v1905_v39  ;;  %v1543_v2 = vsub.f32 %v3720_v51, %v1395_v18  ;;  %v1544_v4 = vsub.f32 %v3718_v46, %v1395_v18 }
 0x36a   : > { %v2742_v3 = vpop.eup %2741  ;;  %2761 = vpow2.f32 %v1700_v58  ;;  %v1545_v47 = vsub.f32 %v3722_v56, %v1395_v18  ;;  %v1706_v49 = vmul.f32 1.442695, %v1542_v27  ;;  %v2059_v45 = vpack.c.bf16 %v2738_v62, %v2730_v17  ;;  %v4717_v58 = vld [vmem:[#allocation23_spill] sm:$0xff] }
 0x36b   : > { %v4048_v5 = vpop.eup %2743  ;;  %2763 = vpow2.f32 %v1702_v7  ;;  %v1907_v48 = vadd.f32 %v2726_v52, %v1906_v43  ;;  %v1708_v50 = vmul.f32 1.442695, %v1543_v2  ;;  %v1710_v25 = vmul.f32 1.442695, %v1544_v4  ;;  %v4719_v4 = vld [vmem:[#allocation24_spill] sm:$0xff] }
 0x36c   : > { %v2746_v28 = vpop.eup %2745  ;;  %2765 = vpow2.f32 %v1704_v42  ;;  %v1712_v23 = vmul.f32 1.442695, %v1545_v47  ;;  %2122 = vmatprep.subr.bf16.mxu1 %v2059_v45  ;;  %v2061_v51 = vpack.c.bf16 %v2742_v3, %v4039_v0  ;;  %v1910_v46 = vadd.f32 %v2730_v17, %v4032_v11  ;;  %v1400_v26 = vpop.xlane.xlu1 %1399  ;;  %v4718_v42 = vld [vmem:[#allocation25_spill] sm:$0xff]  ;;  %v4720_v47 = vld [vmem:[#allocation26_spill] sm:$0xff] }
 0x36d   : > { %v4052_v44 = vpop.eup %2747  ;;  %1908 = vadd.xlane.f32.xlu0 %v1907_v48  ;;  %2767 = vpow2.f32 %v1706_v49  ;;  %v2058_v56 = vpack.c.bf16 %v2736_v20, %v4032_v11  ;;  %v2060_v29 = vpack.c.bf16 %v2740_v40, %v4034_v59  ;;  %v1546_v36 = vsub.f32 %v3729_v1, %v1400_v26 }
 0x36e   : > { %v4057_v35 = vpop.eup %2749  ;;  %2769 = vpow2.f32 %v1708_v50  ;;  %2165 = vmatprep.subr.bf16.mxu0 %v2061_v51  ;;  %v1911_v52 = vadd.f32 %v4034_v59, %v1910_v46  ;;  %v1547_v53 = vsub.f32 %v3734_v8, %v1400_v26  ;;  %v1548_v54 = vsub.f32 %v3731_v6, %v1400_v26 }
 0x36f   : > { %v2752_v10 = vpop.eup %2751  ;;  %2771 = vpow2.f32 %v1710_v25  ;;  %2123 = vmatpush1.bf16.xpose.msra.mxu1 %v2058_v56  ;;  %2166 = vmatpush1.bf16.xpose.msra.mxu0 %v2060_v29  ;;  %v1549_v11 = vsub.f32 %v3736_v9, %v1400_v26  ;;  %v1714_v55 = vmul.f32 1.442695, %v1546_v36  ;;  %v1915_v13 = vadd.f32 %v2738_v62, %v2736_v20  ;;  %v4721_v26 = vld [vmem:[#allocation27_spill] sm:$0xff]  ;;  %v4722_v36 = vld [vmem:[#allocation29_spill] sm:$0xff] }
 0x370   : > { %v2754_v14 = vpop.eup %2753  ;;  %2773 = vpow2.f32 %v1712_v23  ;;  %v1912_v1 = vadd.f32 %v4039_v0, %v1911_v52  ;;  %v1716_v17 = vmul.f32 1.442695, %v1547_v53  ;;  %v1718_v31 = vmul.f32 1.442695, %v1548_v54  ;;  %v1405_v33 = vpop.xlane.xlu1 %1404  ;;  %v4723_v53 = vld [vmem:[#allocation28_spill] sm:$0xff] }
 0x371   : > { %v2756_v38 = vpop.eup %2755  ;;  %2775 = vpow2.f32 %v1714_v55  ;;  %v1720_v8 = vmul.f32 1.442695, %v1549_v11  ;;  %v1916_v32 = vadd.f32 %v2740_v40, %v1915_v13  ;;  %v1550_v6 = vsub.f32 %v3740_v15, %v1405_v33 }
 0x372   : > { %v2758_v59 = vpop.eup %2757  ;;  %1913 = vadd.xlane.f32.xlu0 %v1912_v1  ;;  %2777 = vpow2.f32 %v1716_v17  ;;  %v1551_v9 = vsub.f32 %v3744_v22, %v1405_v33  ;;  %v1552_v34 = vsub.f32 %v3742_v21, %v1405_v33  ;;  %v1553_v60 = vsub.f32 %v4716_v30, %v1405_v33 }
 0x373   : > { %v4068_v61 = vpop.eup %2759  ;;  %2779 = vpow2.f32 %v1718_v31  ;;  %v1917_v63 = vadd.f32 %v2742_v3, %v1916_v32  ;;  %v1722_v0 = vmul.f32 1.442695, %v1550_v6  ;;  %v2063_v41 = vpack.c.bf16 %v2754_v14, %v2746_v28 }
 0x374   : > { %v2762_v16 = vpop.eup %2761  ;;  %2781 = vpow2.f32 %v1720_v8  ;;  %v1724_v19 = vmul.f32 1.442695, %v1551_v9  ;;  %v1726_v18 = vmul.f32 1.442695, %v1552_v34  ;;  %v1728_v15 = vmul.f32 1.442695, %v1553_v60  ;;  %v1410_v20 = vpop.xlane.xlu1 %1409 }
 0x375   : > { %v4070_v57 = vpop.eup %2763  ;;  %2783 = vpow2.f32 %v1722_v0  ;;  %2124 = vmatprep.subr.bf16.mxu1 %v2063_v41  ;;  %v2065_v21 = vpack.c.bf16 %v2758_v59, %v4057_v35  ;;  %v1920_v22 = vadd.f32 %v2746_v28, %v4048_v5  ;;  %v2062_v39 = vpack.c.bf16 %v2752_v10, %v4048_v5  ;;  %v4726_v41 = vld [vmem:[#allocation33_spill] sm:$0xff] }
 0x376   : > { %v4075_v27 = vpop.eup %2765  ;;  %1918 = vadd.xlane.f32.xlu0 %v1917_v63  ;;  %2785 = vpow2.f32 %v1724_v19  ;;  %v2064_v62 = vpack.c.bf16 %v2756_v38, %v4052_v44  ;;  %v1554_v7 = vsub.f32 %v4717_v58, %v1410_v20  ;;  %v1555_v40 = vsub.f32 %v4718_v42, %v1410_v20 }
 0x377   : > { %v2768_v43 = vpop.eup %2767  ;;  %2787 = vpow2.f32 %v1726_v18  ;;  %2167 = vmatprep.subr.bf16.mxu0 %v2065_v21  ;;  %v1921_v2 = vadd.f32 %v4052_v44, %v1920_v22  ;;  %2125 = vmatpush1.bf16.xpose.msra.mxu1 %v2062_v39  ;;  %v1556_v3 = vsub.f32 %v4719_v4, %v1410_v20  ;;  %v1557_v49 = vsub.f32 %v4720_v47, %v1410_v20  ;;  %v4727_v18 = vld [vmem:[#allocation32_spill] sm:$0xff]  ;;  %v4729_v4 = vld [vmem:[#allocation35_spill] sm:$0xff]  ;;  %v4730_v47 = vld [vmem:[#allocation37_spill] sm:$0xff] }
 0x378   : > { %v2770_v45 = vpop.eup %2769  ;;  %2789 = vpow2.f32 %v1728_v15  ;;  %2168 = vmatpush1.bf16.xpose.msra.mxu0 %v2064_v62  ;;  %v1730_v5 = vmul.f32 1.442695, %v1554_v7  ;;  %v1732_v48 = vmul.f32 1.442695, %v1555_v40  ;;  %v1925_v50 = vadd.f32 %v2754_v14, %v2752_v10  ;;  %v1415_v25 = vpop.xlane.xlu1 %1414  ;;  %v4724_v10 = vld [vmem:[#allocation30_spill] sm:$0xff] }
 0x379   : > { %v2772_v28 = vpop.eup %2771  ;;  %v1922_v23 = vadd.f32 %v4057_v35, %v1921_v2  ;;  %v1734_v51 = vmul.f32 1.442695, %v1556_v3  ;;  %v1736_v46 = vmul.f32 1.442695, %v1557_v49  ;;  %v1558_v56 = vsub.f32 %v4721_v26, %v1415_v25 }
 0x37a   : > { %v2774_v44 = vpop.eup %2773  ;;  %2791 = vpow2.f32 %v1730_v5  ;;  %v1926_v29 = vadd.f32 %v2756_v38, %v1925_v50  ;;  %v1559_v52 = vsub.f32 %v4722_v36, %v1415_v25  ;;  %v1560_v54 = vsub.f32 %v4723_v53, %v1415_v25  ;;  %v4731_v5 = vld [vmem:[#allocation36_spill] sm:$0xff] }
 0x37b   : > { %v4087_v11 = vpop.eup %2775  ;;  %1923 = vadd.xlane.f32.xlu0 %v1922_v23  ;;  %2793 = vpow2.f32 %v1732_v48  ;;  %v1561_v55 = vsub.f32 %v4724_v10, %v1415_v25  ;;  %v1738_v13 = vmul.f32 1.442695, %v1558_v56  ;;  %v2067_v14 = vpack.c.bf16 %v2770_v45, %v2762_v16  ;;  %v4733_v10 = vld [vmem:[#allocation39_spill] sm:$0xff] }
 0x37c   : > { %v2778_v35 = vpop.eup %2777  ;;  %2795 = vpow2.f32 %v1734_v51  ;;  %v1927_v1 = vadd.f32 %v2758_v59, %v1926_v29  ;;  %v1740_v17 = vmul.f32 1.442695, %v1559_v52  ;;  %v1742_v31 = vmul.f32 1.442695, %v1560_v54  ;;  %v1420_v33 = vpop.xlane.xlu1 %1419  ;;  %v4725_v59 = vld [vmem:[#allocation31_spill] sm:$0xff] }
 0x37d   : > { %v4090_v8 = vpop.eup %2779  ;;  %2797 = vpow2.f32 %v1736_v46  ;;  %v1744_v38 = vmul.f32 1.442695, %v1561_v55  ;;  %2126 = vmatprep.subr.bf16.mxu1 %v2067_v14  ;;  %v2069_v32 = vpack.c.bf16 %v2774_v44, %v4075_v27  ;;  %v1930_v6 = vadd.f32 %v2762_v16, %v4068_v61 }
 0x37e   : > { %v4094_v9 = vpop.eup %2781  ;;  %2799 = vpow2.f32 %v1738_v13  ;;  %v2066_v34 = vpack.c.bf16 %v2768_v43, %v4068_v61  ;;  %v2068_v30 = vpack.c.bf16 %v2772_v28, %v4070_v57  ;;  %v1562_v60 = vsub.f32 %v4725_v59, %v1420_v33  ;;  %v4728_v61 = vld [vmem:[#allocation34_spill] sm:$0xff]  ;;  %v4734_v13 = vld [vmem:[#allocation41_spill] sm:$0xff] }
 0x37f   : > { %v4099_v63 = vpop.eup %2783  ;;  %1928 = vadd.xlane.f32.xlu0 %v1927_v1  ;;  %2801 = vpow2.f32 %v1740_v17  ;;  %2169 = vmatprep.subr.bf16.mxu0 %v2069_v32  ;;  %v1931_v0 = vadd.f32 %v4070_v57, %v1930_v6  ;;  %v1563_v19 = vsub.f32 %v4726_v41, %v1420_v33  ;;  %v1564_v16 = vsub.f32 %v4727_v18, %v1420_v33 }
 0x380   : > { %v2786_v15 = vpop.eup %2785  ;;  %2803 = vpow2.f32 %v1742_v31  ;;  %2127 = vmatpush1.bf16.xpose.msra.mxu1 %v2066_v34  ;;  %2170 = vmatpush1.bf16.xpose.msra.mxu0 %v2068_v30  ;;  %v1565_v20 = vsub.f32 %v4728_v61, %v1420_v33  ;;  %v1746_v21 = vmul.f32 1.442695, %v1562_v60  ;;  %v1935_v22 = vadd.f32 %v2770_v45, %v2768_v43  ;;  %v1425_v39 = vpop.xlane.xlu1 %1424  ;;  %v4732_v45 = vld [vmem:[#allocation38_spill] sm:$0xff]  ;;  %v4738_v61 = vld [vmem:[#allocation45_spill] sm:$0xff] }
 0x381   : > { %v2788_v62 = vpop.eup %2787  ;;  %2805 = vpow2.f32 %v1744_v38  ;;  %v1932_v58 = vadd.f32 %v4075_v27, %v1931_v0  ;;  %v1748_v7 = vmul.f32 1.442695, %v1563_v19  ;;  %v1750_v42 = vmul.f32 1.442695, %v1564_v16  ;;  %v4736_v33 = vld [vmem:[#allocation42_spill] sm:$0xff]  ;;  %v4737_v19 = vld [vmem:[#allocation43_spill] sm:$0xff] }
 0x382   : > { %v4106_v57 = vpop.eup %2789  ;;  %2807 = vpow2.f32 %v1746_v21  ;;  %v1752_v40 = vmul.f32 1.442695, %v1565_v20  ;;  %v1936_v2 = vadd.f32 %v2772_v28, %v1935_v22  ;;  %v1566_v3 = vsub.f32 %v4729_v4, %v1425_v39  ;;  %v4739_v21 = vld [vmem:[#allocation44_spill] sm:$0xff] }
 0x383   : > { %1933 = vadd.xlane.f32.xlu0 %v1932_v58  ;;  %2809 = vpow2.f32 %v1748_v7  ;;  %v1567_v49 = vsub.f32 %v4730_v47, %v1425_v39  ;;  %v1568_v43 = vsub.f32 %v4731_v5, %v1425_v39  ;;  %v1569_v48 = vsub.f32 %v4732_v45, %v1425_v39  ;;  %v4740_v58 = vld [vmem:[#allocation46_spill] sm:$0xff] }
 0x384   : > { %v4112_v50 = vpop.eup %2791  ;;  %2811 = vpow2.f32 %v1750_v42  ;;  %v1937_v27 = vadd.f32 %v2774_v44, %v1936_v2  ;;  %v1754_v25 = vmul.f32 1.442695, %v1566_v3  ;;  %v2071_v23 = vpack.c.bf16 %v2786_v15, %v2778_v35  ;;  %v1430_v51 = vpop.xlane.xlu1 %1429 }
 0x385   : > { %v2794_v46 = vpop.eup %2793  ;;  %2813 = vpow2.f32 %v1752_v40  ;;  %v1756_v28 = vmul.f32 1.442695, %v1567_v49  ;;  %v1758_v26 = vmul.f32 1.442695, %v1568_v43  ;;  %v1760_v56 = vmul.f32 1.442695, %v1569_v48 }
 0x386   : > { %v4114_v29 = vpop.eup %2795  ;;  %2815 = vpow2.f32 %v1754_v25  ;;  %2128 = vmatprep.subr.bf16.mxu1 %v2071_v23  ;;  %v2073_v36 = vpack.c.bf16 %v4106_v57, %v4094_v9  ;;  %v1940_v52 = vadd.f32 %v2778_v35, %v4087_v11  ;;  %v2070_v44 = vpack.c.bf16 %v4099_v63, %v4087_v11  ;;  %v4735_v35 = vld [vmem:[#allocation40_spill] sm:$0xff]  ;;  %v4741_v48 = vld [vmem:[#allocation47_spill] sm:$0xff]  ;;  %v4742_v23 = vld [vmem:[#allocation49_spill] sm:$0xff] }
 0x387   : > { %v4121_v53 = vpop.eup %2797  ;;  %1938 = vadd.xlane.f32.xlu0 %v1937_v27  ;;  %2817 = vpow2.f32 %v1756_v28  ;;  %v2072_v54 = vpack.c.bf16 %v2788_v62, %v4090_v8  ;;  %v1570_v55 = vsub.f32 %v4733_v10, %v1430_v51  ;;  %v1571_v14 = vsub.f32 %v4734_v13, %v1430_v51  ;;  %v4743_v28 = vld [vmem:[#allocation48_spill] sm:$0xff] }
 0x388   : > { %v2800_v1 = vpop.eup %2799  ;;  %2819 = vpow2.f32 %v1758_v26  ;;  %2171 = vmatprep.subr.bf16.mxu0 %v2073_v36  ;;  %v1941_v17 = vadd.f32 %v4090_v8, %v1940_v52  ;;  %2129 = vmatpush1.bf16.xpose.msra.mxu1 %v2070_v44  ;;  %v1572_v31 = vsub.f32 %v4735_v35, %v1430_v51  ;;  %v1573_v11 = vsub.f32 %v4736_v33, %v1430_v51  ;;  %v1435_v38 = vpop.xlane.xlu1 %1434  ;;  %v4745_v35 = vld [vmem:[#allocation51_spill] sm:$0xff]  ;;  %v4746_v33 = vld [vmem:[#allocation53_spill] sm:$0xff] }
 0x389   : > { %v2802_v32 = vpop.eup %2801  ;;  %2821 = vpow2.f32 %v1760_v56  ;;  %2172 = vmatpush1.bf16.xpose.msra.mxu0 %v2072_v54  ;;  %v1762_v6 = vmul.f32 1.442695, %v1570_v55  ;;  %v1764_v34 = vmul.f32 1.442695, %v1571_v14  ;;  %v1945_v30 = vadd.f32 %v2786_v15, %v4099_v63 }
 0x38a   : > { %v2804_v59 = vpop.eup %2803  ;;  %v1942_v60 = vadd.f32 %v4094_v9, %v1941_v17  ;;  %v1766_v0 = vmul.f32 1.442695, %v1572_v31  ;;  %v1768_v41 = vmul.f32 1.442695, %v1573_v11  ;;  %v1574_v8 = vsub.f32 %v4737_v19, %v1435_v38 }
 0x38b   : > { %v2806_v18 = vpop.eup %2805  ;;  %2823 = vpow2.f32 %v1762_v6  ;;  %v1946_v16 = vadd.f32 %v2788_v62, %v1945_v30  ;;  %v1575_v20 = vsub.f32 %v4738_v61, %v1435_v38  ;;  %v1576_v22 = vsub.f32 %v4739_v21, %v1435_v38 }
 0x38c   : > { %v4134_v39 = vpop.eup %2807  ;;  %1943 = vadd.xlane.f32.xlu0 %v1942_v60  ;;  %2825 = vpow2.f32 %v1764_v34  ;;  %v1577_v63 = vsub.f32 %v4740_v58, %v1435_v38  ;;  %v1770_v15 = vmul.f32 1.442695, %v1574_v8  ;;  %v2075_v7 = vpack.c.bf16 %v2802_v32, %v2794_v46  ;;  %v1440_v9 = vpop.xlane.xlu1 %1439  ;;  %v4747_v38 = vld [vmem:[#allocation52_spill] sm:$0xff] }
 0x38d   : > { %v2810_v42 = vpop.eup %2809  ;;  %2827 = vpow2.f32 %v1766_v0  ;;  %v1947_v40 = vadd.f32 %v4106_v57, %v1946_v16  ;;  %v1772_v2 = vmul.f32 1.442695, %v1575_v20  ;;  %v1774_v4 = vmul.f32 1.442695, %v1576_v22 }
 0x38e   : > { %v4138_v62 = vpop.eup %2811  ;;  %2829 = vpow2.f32 %v1768_v41  ;;  %v1776_v3 = vmul.f32 1.442695, %v1577_v63  ;;  %2130 = vmatprep.subr.bf16.mxu1 %v2075_v7  ;;  %v2077_v47 = vpack.c.bf16 %v2806_v18, %v4121_v53  ;;  %v1950_v49 = vadd.f32 %v2794_v46, %v4112_v50  ;;  %v4749_v63 = vld [vmem:[#allocation55_spill] sm:$0xff]  ;;  %v4750_v7 = vld [vmem:[#allocation57_spill] sm:$0xff] }
 0x38f   : > { %v4142_v5 = vpop.eup %2813  ;;  %2831 = vpow2.f32 %v1770_v15  ;;  %v2074_v43 = vpack.c.bf16 %v2800_v1, %v4112_v50  ;;  %v2076_v45 = vpack.c.bf16 %v2804_v59, %v4114_v29  ;;  %v1578_v57 = vsub.f32 %v4741_v48, %v1440_v9  ;;  %v4744_v50 = vld [vmem:[#allocation50_spill] sm:$0xff] }
 0x390   : > { %v4147_v27 = vpop.eup %2815  ;;  %1948 = vadd.xlane.f32.xlu0 %v1947_v40  ;;  %2833 = vpow2.f32 %v1772_v2  ;;  %2173 = vmatprep.subr.bf16.mxu0 %v2077_v47  ;;  %v1951_v25 = vadd.f32 %v4114_v29, %v1950_v49  ;;  %v1579_v51 = vsub.f32 %v4742_v23, %v1440_v9  ;;  %v1580_v46 = vsub.f32 %v4743_v28, %v1440_v9  ;;  %v1445_v26 = vpop.xlane.xlu1 %1444  ;;  %v4751_v2 = vld [vmem:[#allocation56_spill] sm:$0xff] }
 0x391   : > { %v4152_v56 = vpop.eup %2817  ;;  %2835 = vpow2.f32 %v1774_v4  ;;  %2131 = vmatpush1.bf16.xpose.msra.mxu1 %v2074_v43  ;;  %2174 = vmatpush1.bf16.xpose.msra.mxu0 %v2076_v45  ;;  %v1581_v36 = vsub.f32 %v4744_v50, %v1440_v9  ;;  %v1778_v52 = vmul.f32 1.442695, %v1578_v57  ;;  %v1955_v44 = vadd.f32 %v2802_v32, %v2800_v1  ;;  %v4748_v32 = vld [vmem:[#allocation54_spill] sm:$0xff]  ;;  %v4753_v45 = vld [vmem:[#allocation59_spill] sm:$0xff] }
 0x392   : > { %v4155_v54 = vpop.eup %2819  ;;  %2837 = vpow2.f32 %v1776_v3  ;;  %v1952_v10 = vadd.f32 %v4121_v53, %v1951_v25  ;;  %v1780_v29 = vmul.f32 1.442695, %v1579_v51  ;;  %v1782_v55 = vmul.f32 1.442695, %v1580_v46  ;;  %v4752_v4 = vld [vmem:[#allocation58_spill] sm:$0xff] }
 0x393   : > { %v4158_v13 = vpop.eup %2821  ;;  %2839 = vpow2.f32 %v1778_v52  ;;  %v1784_v14 = vmul.f32 1.442695, %v1581_v36  ;;  %v1956_v17 = vadd.f32 %v2804_v59, %v1955_v44  ;;  %v1582_v31 = vsub.f32 %v4745_v35, %v1445_v26  ;;  %v4756_v36 = vld [vmem:[#allocation62_spill] sm:$0xff] }
 0x394   : > { %1953 = vadd.xlane.f32.xlu0 %v1952_v10  ;;  %2841 = vpow2.f32 %v1780_v29  ;;  %v1583_v11 = vsub.f32 %v4746_v33, %v1445_v26  ;;  %v1584_v1 = vsub.f32 %v4747_v38, %v1445_v26  ;;  %v1585_v6 = vsub.f32 %v4748_v32, %v1445_v26  ;;  %v1450_v0 = vpop.xlane.xlu0 %1449  ;;  %v4755_v26 = vld [vmem:[#allocation60_spill] sm:$0xff] }
 0x395   : > { %v4164_v34 = vpop.eup %2823  ;;  %2843 = vpow2.f32 %v1782_v55  ;;  %v1957_v53 = vadd.f32 %v2806_v18, %v1956_v17  ;;  %v1786_v30 = vmul.f32 1.442695, %v1582_v31  ;;  %v2079_v60 = vpack.c.bf16 %v4152_v56, %v2810_v42 }
 0x396   : > { %v2826_v41 = vpop.eup %2825  ;;  %2845 = vpow2.f32 %v1784_v14  ;;  %v1788_v59 = vmul.f32 1.442695, %v1583_v11  ;;  %v1790_v19 = vmul.f32 1.442695, %v1584_v1  ;;  %v1792_v8 = vmul.f32 1.442695, %v1585_v6  ;;  %v1455_v21 = vpop.xlane.xlu1 %1454 }
 0x397   : > { %v4167_v16 = vpop.eup %2827  ;;  %2847 = vpow2.f32 %v1786_v30  ;;  %2132 = vmatprep.subr.bf16.mxu1 %v2079_v60  ;;  %v2081_v61 = vpack.c.bf16 %v4158_v13, %v4142_v5  ;;  %v1960_v20 = vadd.f32 %v2810_v42, %v4134_v39  ;;  %v2078_v18 = vpack.c.bf16 %v4147_v27, %v4134_v39 }
 0x398   : > { %v2830_v22 = vpop.eup %2829  ;;  %1958 = vadd.xlane.f32.xlu0 %v1957_v53  ;;  %2849 = vpow2.f32 %v1788_v59  ;;  %v2080_v58 = vpack.c.bf16 %v4155_v54, %v4138_v62  ;;  %v1586_v15 = vsub.f32 %v4749_v63, %v1450_v0  ;;  %v1587_v9 = vsub.f32 %v4750_v7, %v1450_v0  ;;  %v4757_v53 = vld [vmem:[#allocation63_spill] sm:$0xff]  ;;  %v4758_v59 = vld [vmem:[#allocation65_spill] sm:$0xff] }
 0x399   : > { %v4178_v40 = vpop.eup %2831  ;;  %2851 = vpow2.f32 %v1790_v19  ;;  %2175 = vmatprep.subr.bf16.mxu0 %v2081_v61  ;;  %v1961_v42 = vadd.f32 %v4138_v62, %v1960_v20  ;;  %2133 = vmatpush1.bf16.xpose.msra.mxu1 %v2078_v18  ;;  %v1588_v39 = vsub.f32 %v4751_v2, %v1450_v0  ;;  %v1589_v3 = vsub.f32 %v4752_v4, %v1450_v0  ;;  %v4754_v62 = vld [vmem:[#allocation61_spill] sm:$0xff]  ;;  %v4763_v2 = vld [vmem:[#allocation68_spill] sm:$0xff]  ;;  %v4764_v4 = vld [vmem:[#allocation70_spill] sm:$0xff] }
 0x39a   : > { %v4183_v47 = vpop.eup %2833  ;;  %2853 = vpow2.f32 %v1792_v8  ;;  %2176 = vmatpush1.bf16.xpose.msra.mxu0 %v2080_v58  ;;  %v1794_v49 = vmul.f32 1.442695, %v1586_v15  ;;  %v1796_v43 = vmul.f32 1.442695, %v1587_v9  ;;  %v1590_v48 = vsub.f32 %v4753_v45, %v1455_v21  ;;  %v4762_v63 = vld [vmem:[#allocation69_spill] sm:$0xff] }
 0x39b   : > { %v4186_v57 = vpop.eup %2835  ;;  %v1962_v25 = vadd.f32 %v4142_v5, %v1961_v42  ;;  %v1798_v23 = vmul.f32 1.442695, %v1588_v39  ;;  %v1800_v51 = vmul.f32 1.442695, %v1589_v3  ;;  %v1591_v28 = vsub.f32 %v4754_v62, %v1455_v21 }
 0x39c   : > { %v4190_v46 = vpop.eup %2837  ;;  %2855 = vpow2.f32 %v1794_v49  ;;  %v1592_v50 = vsub.f32 %v4755_v26, %v1455_v21  ;;  %v1593_v52 = vsub.f32 %v4756_v36, %v1455_v21  ;;  %v1802_v44 = vmul.f32 1.442695, %v1590_v48  ;;  %v1460_v14 = vpop.xlane.xlu0 %1459 }
 0x39d   : > { %v4194_v10 = vpop.eup %2839  ;;  %1963 = vadd.xlane.f32.xlu0 %v1962_v25  ;;  %2857 = vpow2.f32 %v1796_v43  ;;  %v1804_v29 = vmul.f32 1.442695, %v1591_v28  ;;  %v1965_v5 = vadd.f32 %v4152_v56, %v4147_v27  ;;  %v1970_v55 = vadd.f32 %v2826_v41, %v4164_v34 }
 0x39e   : > { %v4199_v17 = vpop.eup %2841  ;;  %2859 = vpow2.f32 %v1798_v23  ;;  %v1806_v35 = vmul.f32 1.442695, %v1592_v50  ;;  %v1808_v31 = vmul.f32 1.442695, %v1593_v52  ;;  %v2083_v33 = vpack.c.bf16 %v4183_v47, %v2826_v41  ;;  %v1465_v60 = vpop.xlane.xlu1 %1464 }
 0x39f   : > { %v4202_v11 = vpop.eup %2843  ;;  %2861 = vpow2.f32 %v1800_v51  ;;  %v1966_v38 = vadd.f32 %v4155_v54, %v1965_v5  ;;  %v1971_v1 = vadd.f32 %v4167_v16, %v1970_v55  ;;  %v2085_v32 = vpack.c.bf16 %v4190_v46, %v2830_v22  ;;  %v4765_v5 = vld [vmem:[#allocation71_spill] sm:$0xff] }
 0x3a0   : > { %v4207_v27 = vpop.eup %2845  ;;  %2863 = vpow2.f32 %v1802_v44  ;;  %2134 = vmatprep.subr.bf16.mxu1 %v2083_v33  ;;  %v2082_v56 = vpack.c.bf16 %v4178_v40, %v4164_v34  ;;  %v2084_v6 = vpack.c.bf16 %v4186_v57, %v4167_v16  ;;  %v1594_v30 = vsub.f32 %v4757_v53, %v1460_v14  ;;  %v4759_v34 = vld [vmem:[#allocation64_spill] sm:$0xff]  ;;  %v4760_v16 = vld [vmem:[#allocation66_spill] sm:$0xff] }
 0x3a1   : > { %v4214_v0 = vpop.eup %2847  ;;  %2865 = vpow2.f32 %v1804_v29  ;;  %v1967_v54 = vadd.f32 %v4158_v13, %v1966_v38  ;;  %v1972_v41 = vadd.f32 %v2830_v22, %v1971_v1  ;;  %2177 = vmatprep.subr.bf16.mxu0 %v2085_v32  ;;  %v1595_v19 = vsub.f32 %v4758_v59, %v1460_v14  ;;  %v4761_v22 = vld [vmem:[#allocation67_spill] sm:$0xff]  ;;  %v4767_v33 = vld [vmem:[#allocation72_spill] sm:$0xff] }
 0x3a2   : > { %v4218_v8 = vpop.eup %2849  ;;  %2867 = vpow2.f32 %v1806_v35  ;;  %2135 = vmatpush1.bf16.xpose.msra.mxu1 %v2082_v56  ;;  %2178 = vmatpush1.bf16.xpose.msra.mxu0 %v2084_v6  ;;  %v1596_v61 = vsub.f32 %v4759_v34, %v1460_v14  ;;  %v1597_v20 = vsub.f32 %v4760_v16, %v1460_v14  ;;  %v1810_v18 = vmul.f32 1.442695, %v1594_v30  ;;  %v4766_v14 = vld [vmem:[#allocation73_spill] sm:$0xff] }
 0x3a3   : > { %v4222_v21 = vpop.eup %2851  ;;  %2869 = vpow2.f32 %v1808_v31  ;;  %1968 = vadd.xlane.f32.xlu0 %v1967_v54  ;;  %1973 = vadd.xlane.f32.xlu1 %v1972_v41  ;;  %v1812_v13 = vmul.f32 1.442695, %v1595_v19  ;;  %v1598_v58 = vsub.f32 %v4761_v22, %v1465_v60  ;;  %v1599_v15 = vsub.f32 %v4762_v63, %v1465_v60 }
 0x3a4   : > { %v4226_v7 = vpop.eup %2853  ;;  %2871 = vpow2.f32 %v1810_v18  ;;  %v1814_v9 = vmul.f32 1.442695, %v1596_v61  ;;  %v1816_v42 = vmul.f32 1.442695, %v1597_v20  ;;  %v1600_v39 = vsub.f32 %v4763_v2, %v1465_v60  ;;  %v1470_v51 = vpop.xlane.xlu0 %1469  ;;  %v4772_v61 = vld [vmem:[#allocation78_spill] sm:$0xff] }
 0x3a5   : > { %2873 = vpow2.f32 %v1812_v13  ;;  %v1601_v3 = vsub.f32 %v4764_v4, %v1465_v60  ;;  %v1818_v49 = vmul.f32 1.442695, %v1598_v58  ;;  %v1820_v43 = vmul.f32 1.442695, %v1599_v15  ;;  %v4769_v60 = vld [vmem:[#allocation75_spill] sm:$0xff] }
 0x3a6   : > { %v4230_v45 = vpop.eup %2855  ;;  %2875 = vpow2.f32 %v1814_v9  ;;  %v1822_v48 = vmul.f32 1.442695, %v1600_v39  ;;  %v1975_v25 = vadd.f32 %v4183_v47, %v4178_v40  ;;  %v1980_v23 = vadd.f32 %v4199_v17, %v4194_v10  ;;  %v1475_v35 = vpop.xlane.xlu1 %1474 }
 0x3a7   : > { %v2858_v62 = vpop.eup %2857  ;;  %2877 = vpow2.f32 %v1816_v42  ;;  %v1824_v28 = vmul.f32 1.442695, %v1601_v3  ;;  %v2087_v26 = vpack.c.bf16 %v4218_v8, %v4199_v17  ;;  %v2089_v50 = vpack.c.bf16 %v4226_v7, %v4207_v27 }
 0x3a8   : > { %v4240_v36 = vpop.eup %2859  ;;  %2879 = vpow2.f32 %v1818_v49  ;;  %v1976_v52 = vadd.f32 %v4186_v57, %v1975_v25  ;;  %v1981_v40 = vadd.f32 %v4202_v11, %v1980_v23  ;;  %v2086_v47 = vpack.c.bf16 %v4214_v0, %v4194_v10 }
 0x3a9   : > { %v4246_v44 = vpop.eup %2861  ;;  %2881 = vpow2.f32 %v1820_v43  ;;  %2136 = vmatprep.subr.bf16.mxu1 %v2087_v26  ;;  %2179 = vmatprep.subr.bf16.mxu0 %v2089_v50  ;;  %v2088_v29 = vpack.c.bf16 %v4222_v21, %v4202_v11  ;;  %v1602_v55 = vsub.f32 %v4765_v5, %v1470_v51  ;;  %v1603_v17 = vsub.f32 %v4766_v14, %v1470_v51  ;;  %v4768_v11 = vld [vmem:[#allocation74_spill] sm:$0xff] }
 0x3aa   : > { %v4252_v31 = vpop.eup %2863  ;;  %2883 = vpow2.f32 %v1822_v48  ;;  %v1977_v57 = vadd.f32 %v4190_v46, %v1976_v52  ;;  %v1982_v10 = vadd.f32 %v4207_v27, %v1981_v40  ;;  %2137 = vmatpush1.bf16.xpose.msra.mxu1 %v2086_v47  ;;  %v1604_v38 = vsub.f32 %v4767_v33, %v1470_v51  ;;  %v4770_v46 = vld [vmem:[#allocation77_spill] sm:$0xff]  ;;  %v4771_v27 = vld [vmem:[#allocation76_spill] sm:$0xff]  ;;  %v4773_v48 = vld [vmem:[#allocation79_spill] sm:$0xff] }
 0x3ab   : > { %v4257_v1 = vpop.eup %2865  ;;  %2885 = vpow2.f32 %v1824_v28  ;;  %2180 = vmatpush1.bf16.xpose.msra.mxu0 %v2088_v29  ;;  %v1605_v32 = vsub.f32 %v4768_v11, %v1470_v51  ;;  %v1826_v56 = vmul.f32 1.442695, %v1602_v55  ;;  %v1828_v6 = vmul.f32 1.442695, %v1603_v17  ;;  %v4775_v28 = vld [vmem:[#allocation80_spill] sm:$0xff]  ;;  %v4777_v47 = vld [vmem:[#allocation83_spill] sm:$0xff] }
 0x3ac   : > { %v4260_v53 = vpop.eup %2867  ;;  %1978 = vadd.xlane.f32.xlu1 %v1977_v57  ;;  %v1830_v30 = vmul.f32 1.442695, %v1604_v38  ;;  %v1606_v54 = vsub.f32 %v4769_v60, %v1475_v35  ;;  %v1607_v41 = vsub.f32 %v4770_v46, %v1475_v35  ;;  %v1608_v59 = vsub.f32 %v4771_v27, %v1475_v35  ;;  %v1480_v63 = vpop.xlane.xlu0 %1479  ;;  %v4778_v57 = vld [vmem:[#allocation85_spill] sm:$0xff]  ;;  %v4779_v33 = vld [vmem:[#allocation84_spill] sm:$0xff]  ;;  %v4780_v11 = vld [vmem:[#allocation86_spill] sm:$0xff] }
 0x3ad   : > { %v4265_v19 = vpop.eup %2869  ;;  %2887 = vpow2.f32 %v1826_v56  ;;  %v1832_v34 = vmul.f32 1.442695, %v1605_v32  ;;  %v1609_v16 = vsub.f32 %v4772_v61, %v1475_v35  ;;  %v1985_v20 = vadd.f32 %v4218_v8, %v4214_v0 }
 0x3ae   : > { %v4270_v18 = vpop.eup %2871  ;;  %2889 = vpow2.f32 %v1828_v6  ;;  %v1834_v13 = vmul.f32 1.442695, %v1606_v54  ;;  %v1836_v22 = vmul.f32 1.442695, %v1607_v41  ;;  %v1838_v58 = vmul.f32 1.442695, %v1608_v59  ;;  %v1485_v3 = vpop.xlane.xlu1 %1484 }
 0x3af   : > { %v2874_v15 = vpop.eup %2873  ;;  %2891 = vpow2.f32 %v1830_v30  ;;  %v1840_v9 = vmul.f32 1.442695, %v1609_v16  ;;  %v1986_v42 = vadd.f32 %v4222_v21, %v1985_v20  ;;  %v2091_v2 = vpack.c.bf16 %v4257_v1, %v2858_v62 }
 0x3b0   : > { %v4274_v39 = vpop.eup %2875  ;;  %1983 = vadd.xlane.f32.xlu1 %v1982_v10  ;;  %2893 = vpow2.f32 %v1832_v34  ;;  %v2093_v0 = vpack.c.bf16 %v4265_v19, %v4246_v44  ;;  %v1990_v8 = vadd.f32 %v2858_v62, %v4230_v45  ;;  %v2090_v4 = vpack.c.bf16 %v4252_v31, %v4230_v45  ;;  %v4774_v45 = vld [vmem:[#allocation81_spill] sm:$0xff] }
 0x3b1   : > { %v4281_v49 = vpop.eup %2877  ;;  %2895 = vpow2.f32 %v1834_v13  ;;  %v1987_v21 = vadd.f32 %v4226_v7, %v1986_v42  ;;  %2138 = vmatprep.subr.bf16.mxu1 %v2091_v2  ;;  %v2092_v43 = vpack.c.bf16 %v4260_v53, %v4240_v36  ;;  %v1610_v25 = vsub.f32 %v4773_v48, %v1480_v63  ;;  %v4776_v7 = vld [vmem:[#allocation82_spill] sm:$0xff] }
 0x3b2   : > { %v4287_v23 = vpop.eup %2879  ;;  %2897 = vpow2.f32 %v1836_v22  ;;  %2181 = vmatprep.subr.bf16.mxu0 %v2093_v0  ;;  %v1991_v51 = vadd.f32 %v4240_v36, %v1990_v8  ;;  %2139 = vmatpush1.bf16.xpose.msra.mxu1 %v2090_v4  ;;  %v1611_v62 = vsub.f32 %v4774_v45, %v1480_v63  ;;  %v1612_v26 = vsub.f32 %v4775_v28, %v1480_v63  ;;  %v4781_v22 = vld [vmem:[#allocation87_spill] sm:$0xff]  ;;  %v4784_v0 = vld [vmem:[#allocation90_spill] sm:$0xff]  ;;  %v4786_v45 = vld [vmem:[#allocation93_spill] sm:$0xff] }
 0x3b3   : > { %v4292_v50 = vpop.eup %2881  ;;  %2899 = vpow2.f32 %v1838_v58  ;;  %2182 = vmatpush1.bf16.xpose.msra.mxu0 %v2092_v43  ;;  %v1613_v52 = vsub.f32 %v4776_v7, %v1480_v63  ;;  %v1842_v40 = vmul.f32 1.442695, %v1610_v25  ;;  %v1614_v29 = vsub.f32 %v4777_v47, %v1485_v3  ;;  %v4782_v63 = vld [vmem:[#allocation89_spill] sm:$0xff] }
 0x3b4   : > { %v4296_v5 = vpop.eup %2883  ;;  %2901 = vpow2.f32 %v1840_v9  ;;  %1988 = vadd.xlane.f32.xlu1 %v1987_v21  ;;  %v1992_v36 = vadd.f32 %v4246_v44, %v1991_v51  ;;  %v1844_v55 = vmul.f32 1.442695, %v1611_v62  ;;  %v1846_v14 = vmul.f32 1.442695, %v1612_v26  ;;  %v1490_v46 = vpop.xlane.xlu0 %1489  ;;  %v4785_v21 = vld [vmem:[#allocation91_spill] sm:$0xff]  ;;  %v4787_v26 = vld [vmem:[#allocation92_spill] sm:$0xff] }
 0x3b5   : > { %v4299_v17 = vpop.eup %2885  ;;  %2903 = vpow2.f32 %v1842_v40  ;;  %v1848_v35 = vmul.f32 1.442695, %v1613_v52  ;;  %v1615_v10 = vsub.f32 %v4778_v57, %v1485_v3  ;;  %v1616_v38 = vsub.f32 %v4779_v33, %v1485_v3  ;;  %v4788_v52 = vld [vmem:[#allocation94_spill] sm:$0xff] }
 0x3b6   : > { %2905 = vpow2.f32 %v1844_v55  ;;  %v1617_v32 = vsub.f32 %v4780_v11, %v1485_v3  ;;  %v1850_v56 = vmul.f32 1.442695, %v1614_v29  ;;  %v1995_v6 = vadd.f32 %v4257_v1, %v4252_v31  ;;  %v1495_v20 = vpop.xlane.xlu1 %1494 }
 0x3b7   : > { %v4306_v30 = vpop.eup %2887  ;;  %2907 = vpow2.f32 %v1846_v14  ;;  %v1852_v44 = vmul.f32 1.442695, %v1615_v10  ;;  %v1854_v60 = vmul.f32 1.442695, %v1616_v38  ;;  %v2095_v54 = vpack.c.bf16 %v4292_v50, %v2874_v15 }
 0x3b8   : > { %v2890_v41 = vpop.eup %2889  ;;  %1993 = vadd.xlane.f32.xlu1 %v1992_v36  ;;  %2909 = vpow2.f32 %v1848_v35  ;;  %v1856_v27 = vmul.f32 1.442695, %v1617_v32  ;;  %v1996_v59 = vadd.f32 %v4260_v53, %v1995_v6  ;;  %v2097_v34 = vpack.c.bf16 %v4299_v17, %v4281_v49  ;;  %v4789_v6 = vld [vmem:[#allocation95_spill] sm:$0xff] }
 0x3b9   : > { %v4312_v61 = vpop.eup %2891  ;;  %2911 = vpow2.f32 %v1850_v56  ;;  %2140 = vmatprep.subr.bf16.mxu1 %v2095_v54  ;;  %v2000_v31 = vadd.f32 %v2874_v15, %v4270_v18  ;;  %v2094_v1 = vpack.c.bf16 %v4287_v23, %v4270_v18  ;;  %v2096_v16 = vpack.c.bf16 %v4296_v5, %v4274_v39  ;;  %v4783_v18 = vld [vmem:[#allocation88_spill] sm:$0xff] }
 0x3ba   : > { %v4319_v13 = vpop.eup %2893  ;;  %2913 = vpow2.f32 %v1852_v44  ;;  %v1997_v53 = vadd.f32 %v4265_v19, %v1996_v59  ;;  %2183 = vmatprep.subr.bf16.mxu0 %v2097_v34  ;;  %v1618_v58 = vsub.f32 %v4781_v22, %v1490_v46  ;;  %v1619_v9 = vsub.f32 %v4782_v63, %v1490_v46 }
 0x3bb   : > { %v4324_v42 = vpop.eup %2895  ;;  %2915 = vpow2.f32 %v1854_v60  ;;  %v2001_v15 = vadd.f32 %v4274_v39, %v2000_v31  ;;  %2141 = vmatpush1.bf16.xpose.msra.mxu1 %v2094_v1  ;;  %2184 = vmatpush1.bf16.xpose.msra.mxu0 %v2096_v16  ;;  %v1620_v2 = vsub.f32 %v4783_v18, %v1490_v46  ;;  %v1621_v8 = vsub.f32 %v4784_v0, %v1490_v46  ;;  %v4790_v60 = vld [vmem:[#allocation97_spill] sm:$0xff] }
 0x3bc   : > { %v4329_v4 = vpop.eup %2897  ;;  %2917 = vpow2.f32 %v1856_v27  ;;  %1998 = vadd.xlane.f32.xlu1 %v1997_v53  ;;  %v1858_v19 = vmul.f32 1.442695, %v1618_v58  ;;  %v1860_v3 = vmul.f32 1.442695, %v1619_v9  ;;  %v1622_v43 = vsub.f32 %v4785_v21, %v1495_v20  ;;  %v1500_v14 = vpop.xlane.xlu0 %1499  ;;  %v4792_v58 = vld [vmem:[#allocation98_spill] sm:$0xff]  ;;  %v4793_v9 = vld [vmem:[#allocation99_spill] sm:$0xff] }
 0x3bd   : > { %v4332_v48 = vpop.eup %2899  ;;  %v2002_v25 = vadd.f32 %v4281_v49, %v2001_v15  ;;  %v1862_v51 = vmul.f32 1.442695, %v1620_v2  ;;  %v1864_v39 = vmul.f32 1.442695, %v1621_v8  ;;  %v1623_v62 = vsub.f32 %v4786_v45, %v1495_v20 }
 0x3be   : > { %v4336_v28 = vpop.eup %2901  ;;  %2919 = vpow2.f32 %v1858_v19  ;;  %v1624_v7 = vsub.f32 %v4787_v26, %v1495_v20  ;;  %v1625_v40 = vsub.f32 %v4788_v52, %v1495_v20  ;;  %v1866_v47 = vmul.f32 1.442695, %v1622_v43  ;;  %v1505_v46 = vpop.xlane.xlu1 %1504 }
 0x3bf   : > { %v4340_v29 = vpop.eup %2903  ;;  %2921 = vpow2.f32 %v1860_v3  ;;  %v1868_v36 = vmul.f32 1.442695, %v1623_v62  ;;  %v2005_v55 = vadd.f32 %v4292_v50, %v4287_v23  ;;  %v2099_v49 = vpack.c.bf16 %v4329_v4, %v2890_v41 }
 0x3c0   : > { %v2906_v35 = vpop.eup %2905  ;;  %2003 = vadd.xlane.f32.xlu1 %v2002_v25  ;;  %2923 = vpow2.f32 %v1862_v51  ;;  %v1870_v57 = vmul.f32 1.442695, %v1624_v7  ;;  %v1872_v10 = vmul.f32 1.442695, %v1625_v40  ;;  %v2101_v33 = vpack.c.bf16 %v4336_v28, %v4319_v13 }
 0x3c1   : > { %v4347_v38 = vpop.eup %2907  ;;  %2925 = vpow2.f32 %v1864_v39  ;;  %v2006_v11 = vadd.f32 %v4296_v5, %v2005_v55  ;;  %2142 = vmatprep.subr.bf16.mxu1 %v2099_v49  ;;  %v2010_v32 = vadd.f32 %v2890_v41, %v4306_v30  ;;  %v2098_v23 = vpack.c.bf16 %v4324_v42, %v4306_v30  ;;  %v4791_v30 = vld [vmem:[#allocation96_spill] sm:$0xff] }
 0x3c2   : > { %v4353_v50 = vpop.eup %2909  ;;  %2927 = vpow2.f32 %v1866_v47  ;;  %2185 = vmatprep.subr.bf16.mxu0 %v2101_v33  ;;  %v2100_v56 = vpack.c.bf16 %v4332_v48, %v4312_v61  ;;  %v1626_v44 = vsub.f32 %v4789_v6, %v1500_v14  ;;  %v1627_v54 = vsub.f32 %v4790_v60, %v1500_v14 }
 0x3c3   : > { %v2912_v27 = vpop.eup %2911  ;;  %2929 = vpow2.f32 %v1868_v36  ;;  %v2007_v5 = vadd.f32 %v4299_v17, %v2006_v11  ;;  %v2011_v41 = vadd.f32 %v4312_v61, %v2010_v32  ;;  %2143 = vmatpush1.bf16.xpose.msra.mxu1 %v2098_v23  ;;  %v1628_v59 = vsub.f32 %v4791_v30, %v1500_v14 }
 0x3c4   : > { %v2914_v34 = vpop.eup %2913  ;;  %2931 = vpow2.f32 %v1870_v57  ;;  %2186 = vmatpush1.bf16.xpose.msra.mxu0 %v2100_v56  ;;  %v1629_v31 = vsub.f32 %v3976_v37, %v1500_v14  ;;  %v1874_v1 = vmul.f32 1.442695, %v1626_v44  ;;  %v1876_v16 = vmul.f32 1.442695, %v1627_v54 }
 0x3c5   : > { %v2916_v20 = vpop.eup %2915  ;;  %2933 = vpow2.f32 %v1872_v10  ;;  %2008 = vadd.xlane.f32.xlu1 %v2007_v5  ;;  %v2012_v53 = vadd.f32 %v4319_v13, %v2011_v41  ;;  %v1878_v22 = vmul.f32 1.442695, %v1628_v59  ;;  %v1630_v17 = vsub.f32 %v4792_v58, %v1505_v46 }
 0x3c6   : > { %v2918_v63 = vpop.eup %2917  ;;  %2935 = vpow2.f32 %v1874_v1  ;;  %v1880_v61 = vmul.f32 1.442695, %v1629_v31  ;;  %v1631_v15 = vsub.f32 %v4793_v9, %v1505_v46  ;;  %v1632_v18 = vsub.f32 %v3982_v24, %v1505_v46 }
 0x3c7   : > { %2937 = vpow2.f32 %v1876_v16  ;;  %v1633_v37 = vsub.f32 %v3986_v12, %v1505_v46  ;;  %v1882_v2 = vmul.f32 1.442695, %v1630_v17  ;;  %v2015_v0 = vadd.f32 %v4329_v4, %v4324_v42 }
 0x3c8   : > { %v2920_v8 = vpop.eup %2919  ;;  %2939 = vpow2.f32 %v1878_v22  ;;  %v1884_v13 = vmul.f32 1.442695, %v1631_v15  ;;  %v1886_v19 = vmul.f32 1.442695, %v1632_v18  ;;  %v2103_v3 = vpack.c.bf16 %v2914_v34, %v2906_v35 }
 0x3c9   : > { %v2922_v21 = vpop.eup %2921  ;;  %2013 = vadd.xlane.f32.xlu1 %v2012_v53  ;;  %2941 = vpow2.f32 %v1880_v61  ;;  %v1888_v43 = vmul.f32 1.442695, %v1633_v37  ;;  %v2016_v25 = vadd.f32 %v4332_v48, %v2015_v0  ;;  %v2105_v24 = vpack.c.bf16 %v2918_v63, %v4353_v50  ;;  %v2116_v53 = vld [vmem:[#allocation4 + $0x10] sm:$0xff] }
 0x3ca   : > { %v2924_v51 = vpop.eup %2923  ;;  %2943 = vpow2.f32 %v1882_v2  ;;  %2144 = vmatprep.subr.bf16.mxu1 %v2103_v3  ;;  %v2020_v12 = vadd.f32 %v2906_v35, %v4340_v29  ;;  %v2102_v42 = vpack.c.bf16 %v2912_v27, %v4340_v29  ;;  %v2104_v4 = vpack.c.bf16 %v2916_v20, %v4347_v38 }
 0x3cb   : > { %v2926_v39 = vpop.eup %2925  ;;  %2945 = vpow2.f32 %v1884_v13  ;;  %v2017_v45 = vadd.f32 %v4336_v28, %v2016_v25  ;;  %2187 = vmatprep.subr.bf16.mxu0 %v2105_v24  ;;  %v2025_v62 = vadd.f32 %v2914_v34, %v2912_v27  ;;  %v2030_v26 = vadd.f32 %v2922_v21, %v2920_v8 }
 0x3cc   : > { %v2928_v7 = vpop.eup %2927  ;;  %2947 = vpow2.f32 %v1886_v19  ;;  %v2021_v48 = vadd.f32 %v4347_v38, %v2020_v12  ;;  %2145 = vmatpush1.bf16.xpose.msra.mxu1 %v2102_v42  ;;  %2188 = vmatpush1.bf16.xpose.msra.mxu0 %v2104_v4  ;;  %v4378_v17 = vstv %s2204_s21 }
 0x3cd   : > { %v2930_v52 = vpop.eup %2929  ;;  %2949 = vpow2.f32 %v1888_v43  ;;  %2018 = vadd.xlane.f32.xlu1 %v2017_v45  ;;  %v2026_v40 = vadd.f32 %v2916_v20, %v2025_v62  ;;  %v2031_v47 = vadd.f32 %v2924_v51, %v2030_v26  ;;  %v2106_v29 = vpack.c.bf16 %v2928_v7, %v2920_v8  ;;  %v2114_v20 = vld [vmem:[#allocation4] sm:$0xff] }
 0x3ce   : > { %v2932_v36 = vpop.eup %2931  ;;  %v2022_v55 = vadd.f32 %v4353_v50, %v2021_v48  ;;  %v2107_v49 = vpack.c.bf16 %v2930_v52, %v2922_v21  ;;  %v2035_v28 = vadd.f32 %v2930_v52, %v2928_v7 }
 0x3cf   : > { %v2934_v14 = vpop.eup %2933  ;;  %v2027_v35 = vadd.f32 %v2918_v63, %v2026_v40  ;;  %v2032_v57 = vadd.f32 %v2926_v39, %v2031_v47  ;;  %v2108_v10 = vpack.c.bf16 %v2932_v36, %v2924_v51 }
 0x3d0   : > { %v2936_v33 = vpop.eup %2935  ;;  %2146 = vmatprep.subr.bf16.mxu1 %v2107_v49  ;;  %v2109_v38 = vpack.c.bf16 %v2934_v14, %v2926_v39  ;;  %v2036_v11 = vadd.f32 %v2932_v36, %v2035_v28 }
 0x3d1   : > { %v2938_v32 = vpop.eup %2937  ;;  %2023 = vadd.xlane.f32.xlu1 %v2022_v55 }
 0x3d2   : > { %v2940_v23 = vpop.eup %2939  ;;  %2189 = vmatprep.subr.bf16.mxu0 %v2109_v38  ;;  %v2037_v56 = vadd.f32 %v2934_v14, %v2036_v11  ;;  %v2040_v6 = vadd.f32 %v2938_v32, %v2936_v33 }
 0x3d3   : > { %v2942_v44 = vpop.eup %2941 }
 0x3d4   : > { %v2944_v60 = vpop.eup %2943  ;;  %2147 = vmatpush1.bf16.xpose.msra.mxu1 %v2106_v29  ;;  %2190 = vmatpush1.bf16.xpose.msra.mxu0 %v2108_v10  ;;  %v2041_v50 = vadd.f32 %v2940_v23, %v2040_v6 }
 0x3d5   : > { %v2946_v54 = vpop.eup %2945  ;;  %2028 = vadd.xlane.f32.xlu1 %v2027_v35  ;;  %v2110_v46 = vpack.c.bf16 %v2944_v60, %v2936_v33 }
 0x3d6   : > { %v2948_v27 = vpop.eup %2947  ;;  %v2111_v5 = vpack.c.bf16 %v2946_v54, %v2938_v32  ;;  %v2042_v41 = vadd.f32 %v2942_v44, %v2041_v50  ;;  %v2045_v30 = vadd.f32 %v2946_v54, %v2944_v60 }
 0x3d7   : > { %v2950_v59 = vpop.eup %2949  ;;  %v2112_v34 = vpack.c.bf16 %v2948_v27, %v2940_v23 }
 0x3d8   : > { %2148 = vmatprep.subr.bf16.mxu1 %v2111_v5  ;;  %v2113_v31 = vpack.c.bf16 %v2950_v59, %v2942_v44  ;;  %v2046_v1 = vadd.f32 %v2948_v27, %v2045_v30 }
 0x3d9   : > { %2033 = vadd.xlane.f32.xlu1 %v2032_v57 }
 0x3da   : > { %2191 = vmatprep.subr.bf16.mxu0 %v2113_v31  ;;  %v2047_v16 = vadd.f32 %v2950_v59, %v2046_v1 }
 0x3dc   : > { %2149 = vmatpush1.bf16.xpose.msra.mxu1 %v2110_v46  ;;  %2192 = vmatpush1.bf16.xpose.msra.mxu0 %v2112_v34 }
 0x3dd   : > { %2038 = vadd.xlane.f32.xlu1 %v2037_v56 }
 0x3e1   : > { %2043 = vadd.xlane.f32.xlu1 %v2042_v41 }
 0x3e3   : > { %2151 = vmatmul.mubr.bf16.vlgmr.msra.gmra.mrb[64].mxu1 %v2114_v20  ;;  %2194 = vmatmul.mubr.bf16.vlgmr.msra.gmra.mrb[64].mxu0 %v2116_v53 }
 0x3e5   : > { %2048 = vadd.xlane.f32.xlu1 %v2047_v16 }
 0x3e9   : > { %v1894_v22 = vpop.xlane.xlu0 %1893 }
 0x3ea   : > { %2951 = vrcp.f32 %v1894_v22 }
 0x3f1   : > { %v1899_v58 = vpop.xlane.xlu0 %1898 }
 0x3f2   : > { %2953 = vrcp.f32 %v1899_v58 }
 0x3f4   : > { %v2952_v63 = vpop.eup %2951 }
 0x3f5   : > { %v1904_v61 = vpop.xlane.xlu0 %1903  ;;  %v2238_v9 = vmul.f32 %v2952_v63, %v4378_v17 }
 0x3f6   : > { %2955 = vrcp.f32 %v1904_v61 }
 0x3f7   : > { %2270 = vxpose.xlu0.b32.start [1/16] (narrow) %v2238_v9, 8 }
 0x3fa   : > { %v1909_v15 = vpop.xlane.xlu0 %1908 }
 0x3fb   : > { %2957 = vrcp.f32 %v1909_v15 }
 0x3fc   : > { %v2954_v18 = vpop.eup %2953 }
 0x3fd   : > { %v2239_v37 = vmul.f32 %v2954_v18, %v4378_v17 }
 0x3ff   : > { %v1914_v2 = vpop.xlane.xlu0 %1913  ;;  %2271 = vxpose.xlu0.b32.cont [2/16] (narrow) %v2239_v37, 8 }
 0x400   : > { %v2956_v0 = vpop.eup %2955  ;;  %2959 = vrcp.f32 %v1914_v2 }
 0x401   : > { %v2240_v8 = vmul.f32 %v2956_v0, %v4378_v17 }
 0x403   : > { %v1919_v13 = vpop.xlane.xlu0 %1918  ;;  %2272 = vxpose.xlu0.b32.cont [3/16] (narrow) %v2240_v8, 8 }
 0x404   : > { %2961 = vrcp.f32 %v1919_v13 }
 0x405   : > { %v2958_v19 = vpop.eup %2957 }
 0x406   : > { %v2241_v3 = vmul.f32 %v2958_v19, %v4378_v17 }
 0x408   : > { %v1924_v21 = vpop.xlane.xlu0 %1923  ;;  %2273 = vxpose.xlu0.b32.cont [4/16] (narrow) %v2241_v3, 8 }
 0x409   : > { %2963 = vrcp.f32 %v1924_v21 }
 0x40a   : > { %v2960_v43 = vpop.eup %2959 }
 0x40b   : > { %v2242_v25 = vmul.f32 %v2960_v43, %v4378_v17 }
 0x40c   : > { %v1929_v24 = vpop.xlane.xlu0 %1928 }
 0x40d   : > { %2965 = vrcp.f32 %v1929_v24  ;;  %2274 = vxpose.xlu0.b32.cont [5/16] (narrow) %v2242_v25, 8 }
 0x40e   : > { %v2962_v51 = vpop.eup %2961 }
 0x40f   : > { %v2243_v12 = vmul.f32 %v2962_v51, %v4378_v17 }
 0x410   : > { %v1934_v42 = vpop.xlane.xlu0 %1933 }
 0x411   : > { %2967 = vrcp.f32 %v1934_v42  ;;  %2275 = vxpose.xlu0.b32.cont [6/16] (narrow) %v2243_v12, 8 }
 0x413   : > { %v2964_v4 = vpop.eup %2963 }
 0x414   : > { %v1939_v39 = vpop.xlane.xlu0 %1938  ;;  %v2244_v45 = vmul.f32 %v2964_v4, %v4378_v17 }
 0x415   : > { %2969 = vrcp.f32 %v1939_v39 }
 0x416   : > { %2276 = vxpose.xlu0.b32.cont [7/16] (narrow) %v2244_v45, 8 }
 0x417   : > { %v2966_v62 = vpop.eup %2965 }
 0x418   : > { %v2245_v26 = vmul.f32 %v2966_v62, %v4378_v17 }
 0x419   : > { %v1944_v7 = vpop.xlane.xlu0 %1943 }
 0x41a   : > { %2971 = vrcp.f32 %v1944_v7  ;;  %2277 = vxpose.xlu0.b32.cont [8/16] (narrow) %v2245_v26, 8 }
 0x41b   : > { %v2968_v48 = vpop.eup %2967 }
 0x41c   : > { %v2246_v52 = vmul.f32 %v2968_v48, %v4378_v17 }
 0x41d   : > { %v1949_v40 = vpop.xlane.xlu0 %1948 }
 0x41e   : > { %2973 = vrcp.f32 %v1949_v40  ;;  %2278 = vxpose.xlu0.b32.cont [9/16] (narrow) %v2246_v52, 8 }
 0x41f   : > { %v2970_v47 = vpop.eup %2969 }
 0x420   : > { %v2247_v29 = vmul.f32 %v2970_v47, %v4378_v17 }
 0x421   : > { %v1954_v36 = vpop.xlane.xlu0 %1953 }
 0x422   : > { %2975 = vrcp.f32 %v1954_v36  ;;  %2279 = vxpose.xlu0.b32.cont [10/16] (narrow) %v2247_v29, 8 }
 0x424   : > { %v2972_v55 = vpop.eup %2971 }
 0x425   : > { %v1959_v49 = vpop.xlane.xlu0 %1958  ;;  %v2248_v28 = vmul.f32 %v2972_v55, %v4378_v17  ;;  %v4794_v55 = vld [vmem:[#allocation21_spill] sm:$0xff] }
 0x426   : > { %2977 = vrcp.f32 %v1959_v49  ;;  %v2336_v49 = vsub.s32 0, %v4794_v55 }
 0x427   : > { %2280 = vxpose.xlu0.b32.cont [11/16] (narrow) %v2248_v28, 8 }
 0x428   : > { %v2974_v14 = vpop.eup %2973 }
 0x429   : > { %v2249_v35 = vmul.f32 %v2974_v14, %v4378_v17 }
 0x42a   : > { %v1964_v57 = vpop.xlane.xlu0 %1963 }
 0x42b   : > { %2979 = vrcp.f32 %v1964_v57  ;;  %2281 = vxpose.xlu0.b32.cont [12/16] (narrow) %v2249_v35, 8 }
 0x42c   : > { %v2976_v10 = vpop.eup %2975 }
 0x42d   : > { %v2250_v33 = vmul.f32 %v2976_v10, %v4378_v17 }
 0x42f   : > { %2282 = vxpose.xlu0.b32.cont [13/16] (narrow) %v2250_v33, 8 }
 0x430   : > { %v2978_v38 = vpop.eup %2977  ;;  %v1969_v11 = vpop.xlane.xlu0 %1968 }
 0x431   : > { %v1974_v32 = vpop.xlane.xlu1 %1973  ;;  %2981 = vrcp.f32 %v1969_v11  ;;  %v2251_v23 = vmul.f32 %v2978_v38, %v4378_v17 }
 0x432   : > { %2983 = vrcp.f32 %v1974_v32 }
 0x433   : > { %2283 = vxpose.xlu0.b32.cont [14/16] (narrow) %v2251_v23, 8 }
 0x435   : > { %v2980_v56 = vpop.eup %2979 }
 0x436   : > { %v2252_v6 = vmul.f32 %v2980_v56, %v4378_v17  ;;  %v2346_v56 = vld [vmem:[%s3506_s14] sm:$0xff] }
 0x438   : > { %2284 = vxpose.xlu0.b32.cont [15/16] (narrow) %v2252_v6, 8 }
 0x439   : > { %v1979_v44 = vpop.xlane.xlu1 %1978 }
 0x43a   : > { %2985 = vrcp.f32 %v1979_v44 }
 0x43b   : > { %v2982_v60 = vpop.eup %2981 }
 0x43c   : > { %v2984_v50 = vpop.eup %2983  ;;  %v2253_v54 = vmul.f32 %v2982_v60, %v4378_v17 }
 0x43d   : > { %v1984_v46 = vpop.xlane.xlu1 %1983  ;;  %v2254_v27 = vmul.f32 %v2984_v50, %v4378_v17 }
 0x43e   : > { %2987 = vrcp.f32 %v1984_v46  ;;  %2285 = vxpose.xlu0.b32.end [16/16] (narrow) %v2253_v54, 8  ;;  %v2348_v54 = vld [vmem:[%s3506_s14 + $0x10] sm:$0xff] }
 0x43f   : > { %2302 = vxpose.xlu1.b32.start [1/16] (narrow) %v2254_v27, 8 }
 0x441   : > { %v1989_v5 = vpop.xlane.xlu1 %1988 }
 0x442   : > { %2989 = vrcp.f32 %v1989_v5 }
 0x444   : > { %v2986_v41 = vpop.eup %2985 }
 0x445   : > { %v1994_v30 = vpop.xlane.xlu1 %1993  ;;  %v2255_v59 = vmul.f32 %v2986_v41, %v4378_v17 }
 0x446   : > { %2991 = vrcp.f32 %v1994_v30 }
 0x447   : > { %2303 = vxpose.xlu1.b32.cont [2/16] (narrow) %v2255_v59, 8  ;;  %v2347_v59 = vld [vmem:[%s3506_s14 + $0x8] sm:$0xff] }
 0x448   : > { %v2988_v34 = vpop.eup %2987 }
 0x449   : > { %v1999_v31 = vpop.xlane.xlu1 %1998  ;;  %v2256_v1 = vmul.f32 %v2988_v34, %v4378_v17  ;;  %v2349_v34 = vld [vmem:[%s3506_s14 + $0x18] sm:$0xff]  ;;  %s3212_s14 = smov [#allocation11]  }
 0x44a   : > { %2993 = vrcp.f32 %v1999_v31  ;;  %s3079_s30 = sshll.u32 %s3212_s14, 4  ;;  %s3080_s30 = int_to_ptr.vmem [resolvable:$false] %s3079_s30 }
 0x44b   : > { %2304 = vxpose.xlu1.b32.cont [3/16] (narrow) %v2256_v1, 8  ;;  %s3081_s0 = scalar_lea.vmem %s3080_s30, 1024  ;;  %p3082_p5 = scmp.lt.s32.totalorder %s4427_s8, %s3080_s30 }
 0x44c   : > { %v2990_v16 = vpop.eup %2989  ;;  %p3083_p8 = scmp.lt.s32.totalorder %s3081_s0, %s3075_s28 }
 0x44d   : > { %v2004_v20 = vpop.xlane.xlu1 %2003  ;;  %v2257_v53 = vmul.f32 %v2990_v16, %v4378_v17 }
 0x44e   : > { %2995 = vrcp.f32 %v2004_v20  ;;  %p3084_p12 = por %p3083_p8, %p3082_p5 }
 0x44f   : > { %2305 = vxpose.xlu1.b32.cont [4/16] (narrow) %v2257_v53, 8 }
 0x450   : > { %v2992_v22 = vpop.eup %2991  ;;  %p3085_p9 = pnand %p3084_p12, %p3078_p13 }
 0x451   : > { %v2258_v58 = vmul.f32 %v2992_v22, %v4378_v17 }
 0x452   : > { %v2009_v63 = vpop.xlane.xlu1 %2008 }
 0x453   : > { %2997 = vrcp.f32 %v2009_v63  ;;  %2306 = vxpose.xlu1.b32.cont [5/16] (narrow) %v2258_v58, 8 }
 0x454   : > { %v2994_v61 = vpop.eup %2993 }
 0x455   : > { %v2259_v9 = vmul.f32 %v2994_v61, %v4378_v17 }
 0x456   : > { %v2014_v15 = vpop.xlane.xlu1 %2013 }
 0x457   : > { %2999 = vrcp.f32 %v2014_v15  ;;  %2307 = vxpose.xlu1.b32.cont [6/16] (narrow) %v2259_v9, 8 }
 0x458   : > { %v2996_v18 = vpop.eup %2995 }
 0x459   : > { %v2260_v37 = vmul.f32 %v2996_v18, %v4378_v17 }
 0x45a   : > { %v2019_v2 = vpop.xlane.xlu1 %2018 }
 0x45b   : > { %3001 = vrcp.f32 %v2019_v2  ;;  %2308 = vxpose.xlu1.b32.cont [7/16] (narrow) %v2260_v37, 8 }
 0x45d   : > { %v2998_v0 = vpop.eup %2997 }
 0x45e   : > { %v2024_v8 = vpop.xlane.xlu1 %2023  ;;  %v2261_v13 = vmul.f32 %v2998_v0, %v4378_v17 }
 0x45f   : > { %3003 = vrcp.f32 %v2024_v8 }
 0x460   : > { %2309 = vxpose.xlu1.b32.cont [8/16] (narrow) %v2261_v13, 8 }
 0x461   : > { %v3000_v19 = vpop.eup %2999 }
 0x462   : > { %v2029_v3 = vpop.xlane.xlu1 %2028  ;;  %v2262_v21 = vmul.f32 %v3000_v19, %v4378_v17 }
 0x463   : > { %3005 = vrcp.f32 %v2029_v3 }
 0x464   : > { %2310 = vxpose.xlu1.b32.cont [9/16] (narrow) %v2262_v21, 8 }
 0x465   : > { %v3002_v43 = vpop.eup %3001 }
 0x466   : > { %v2034_v25 = vpop.xlane.xlu1 %2033  ;;  %v2263_v24 = vmul.f32 %v3002_v43, %v4378_v17 }
 0x467   : > { %3007 = vrcp.f32 %v2034_v25 }
 0x468   : > { %2311 = vxpose.xlu1.b32.cont [10/16] (narrow) %v2263_v24, 8 }
 0x469   : > { %v3004_v51 = vpop.eup %3003 }
 0x46a   : > { %v2039_v12 = vpop.xlane.xlu1 %2038  ;;  %v2264_v42 = vmul.f32 %v3004_v51, %v4378_v17 }
 0x46b   : > { %3009 = vrcp.f32 %v2039_v12 }
 0x46c   : > { %2312 = vxpose.xlu1.b32.cont [11/16] (narrow) %v2264_v42, 8 }
 0x46d   : > { %v3006_v4 = vpop.eup %3005 }
 0x46e   : > { %v2044_v39 = vpop.xlane.xlu1 %2043  ;;  %v2265_v45 = vmul.f32 %v3006_v4, %v4378_v17 }
 0x46f   : > { %3011 = vrcp.f32 %v2044_v39 }
 0x470   : > { %2313 = vxpose.xlu1.b32.cont [12/16] (narrow) %v2265_v45, 8 }
 0x471   : > { %v3008_v62 = vpop.eup %3007 }
 0x472   : > { %v2049_v26 = vpop.xlane.xlu1 %2048  ;;  %v2266_v7 = vmul.f32 %v3008_v62, %v4378_v17 }
 0x473   : > { %3013 = vrcp.f32 %v2049_v26 }
 0x474   : > { %2314 = vxpose.xlu1.b32.cont [13/16] (narrow) %v2266_v7, 8 }
 0x475   : > { %v3010_v48 = vpop.eup %3009 }
 0x476   : > { %v2267_v52 = vmul.f32 %v3010_v48, %v4378_v17 }
 0x478   : > { %2315 = vxpose.xlu1.b32.cont [14/16] (narrow) %v2267_v52, 8 }
 0x479   : > { %v3012_v40 = vpop.eup %3011 }
 0x47a   : > { %v2268_v47 = vmul.f32 %v3012_v40, %v4378_v17 }
 0x47c   : > { %2316 = vxpose.xlu1.b32.cont [15/16] (narrow) %v2268_v47, 8 }
 0x47d   : > { %v3014_v29 = vpop.eup %3013 }
 0x47e   : > { %v2269_v36 = vmul.f32 %v3014_v29, %v4378_v17 }
 0x480   : > { %2317 = vxpose.xlu1.b32.end [16/16] (narrow) %v2269_v36, 8 }
 0x482   : > { %v2286_v28 = vpop.trf.xlu0 }
 0x483   : > { %v2337_v14 = vrot.slane %v2286_v28, %v2336_v49 }
 0x4b6   : > { %v2152_v35 = vpop.f32.mrb[64].mxu1  ;;  %v2195_v57 = vpop.f32.mrb[64].mxu0 }
 0x4b7   : > { %v2196_v10 = vadd.f32 %v2195_v57, %v2152_v35  ;;  %v2154_v33 = vpop.f32.mrb[65].mxu1  ;;  %v2197_v38 = vpop.f32.mrb[65].mxu0 }
 0x4b8   : > { %v2198_v11 = vadd.f32 %v2197_v38, %v2154_v33  ;;  %v2156_v32 = vpop.f32.mrb[66].mxu1  ;;  %v2199_v23 = vpop.f32.mrb[66].mxu0 }
 0x4b9   : > { %v2200_v17 = vadd.f32 %v2199_v23, %v2156_v32  ;;  %v2158_v6 = vpop.f32.mrb[67].mxu1  ;;  %v2201_v44 = vpop.f32.mrb[67].mxu0  ;;  %v2342_v60 = vmul.f32 %v2337_v14, %v2196_v10 }
 0x4ba   : > { %v2202_v50 = vadd.f32 %v2201_v44, %v2158_v6 }
 0x4bb   : > { %v2344_v46 = vmul.f32 %v2337_v14, %v2200_v17  ;;  %v2350_v27 = vadd.f32 %v2346_v56, %v2342_v60 }
 0x4bd   : > { %v2352_v5 = vadd.f32 %v2348_v54, %v2344_v46  ;;  %2354 = vst [vmem:[%s3512_s3] sm:$0xff] %v2350_v27 }
 0x4bf   : > { %2356 = vst [vmem:[%s3512_s3 + $0x10] sm:$0xff] %v2352_v5 }
 0x4c4   : > { %v2318_v41 = vpop.trf.xlu1 }
 0x4c5   : > { %v2341_v30 = vrot.slane %v2318_v41, %v2336_v49 }
 0x4c7   : > { %v2343_v31 = vmul.f32 %v2341_v30, %v2198_v11  ;;  %v2345_v1 = vmul.f32 %v2341_v30, %v2202_v50 }
 0x4c9   : > { %v2351_v16 = vadd.f32 %v2347_v59, %v2343_v31  ;;  %v2353_v20 = vadd.f32 %v2349_v34, %v2345_v1 }
 0x4cb   : > { %2355 = vst [vmem:[%s3512_s3 + $0x8] sm:$0xff] %v2351_v16  ;;  %2357 = vst [vmem:[%s3512_s3 + $0x18] sm:$0xff] %v2353_v20 }
 0x4cc   : > { %3088 = shalt.err (!%p3085_p9)
}
 0x4cd   : > { %s3089_s3 = scalar_lea.hbm %s4425_s10, 512  ;;  %s3093_s22 = scalar_lea.hbm %s4797_s25, 2048 }
 0x4ce   : > { %p3090_p4 = scmp.ne.s32.totalorder %s4425_s10, %s3089_s3  ;;  %p3094_p11 = scmp.lt.u32.totalorder %s4425_s10, %s4797_s25 }
 0x4cf   : > { %p3095_p6 = scmp.lt.u32.totalorder %s3093_s22, %s3089_s3  ;;  %p3097_p1 = scmp.lt.u32.totalorder %s3089_s3, %s4425_s10 }
 0x4d0   : > { %p3091_p0 = pnand %p3090_p4, %p4798_p10 }
 0x4d1   : > { %p3096_p2 = por %p3095_p6, %p3094_p11 }
 0x4d2   : > { %p3092_p3 = pneg %p3091_p0 }
 0x4d3   : > { %p3098_p7 = por %p3097_p1, %p3096_p2 }
 0x4d5   : > { %p3099_p13 = pnand %p3098_p7, %p3092_p3 }
 0x4d7   : > { %3102 = shalt.err (!%p3099_p13)
}
 0x4d8   : > { %s3213_s4 = smov 256   ;;  %s3214_s5 = smov 512  }
 0x4d9   : > { %s3215_s2 = smov 16  }
 0x4da   : > { %2573 = dma.vmem_to_hbm [thread:$0]  (%p4798_p10), %s4427_s8, 512, %s4425_s10, %s2359_s17, %s3213_s4, %s3214_s5, %s3215_s2  }
 0x4db PF: > { %s4799_s7 = sld [smem:[#allocation15_spill]]  ;;  %s4800_s28 = sld [smem:[#allocation20_spill]] }
 0x4dc   : > { %p2587_p5 = scmp.ge.s32.totalorder %s3201_s20, 2 }
 0x4e1   : > { %s2389_s14 = sand.u32 1, %s4799_s7   ;;  %p4801_p8 = scmp.ne.s32.totalorder %s4800_s28, 0 }
 0x4e2   : > { %s2390_s30 = scalar_lea.sflag [#allocation8], %s2389_s14 }
 0x4e3   : > { %p2583_p12 = pnand %p2587_p5, %p4801_p8 }
 0x4e5   : > { %3156 = dma.done.wait (!%p2583_p12), %s2390_s30, 512  }
 0x4e6   : > { %3158 = vsyncadd (!%p2583_p12), %s2390_s30, 4294966784  ;;  %s29_s20 = sadd.s32 1, %s3201_s20   ;;  %s4802_s0 = smov %s3445_s11 }
 0x4e7   : > { %p26_p9 = scmp.ge.s32.totalorder %s29_s20, 6   ;;  %s4803_s27 = sld [smem:[#allocation17_spill]] }
 0x4e8   : > { %s4804_s6 = sld [smem:[#allocation18_spill]]  ;;  %s4805_s11 = smov %s3165_s12 }
 0x4e9   : > { %s4806_s12 = smov %s3169_s13  ;;  %s4807_s13 = smov %s4802_s0 }
 0x4ea   : > { %s4808_s14 = smov %s3177_s15  ;;  %s4809_s15 = smov %s3181_s16 }
 0x4eb   : > { %s4810_s16 = smov %s3442_s26  ;;  %s4811_s17 = smov %s3193_s18 }
 0x4ec   : > { %s4812_s8 = smov %s3197_s19  ;;  %28 = sbr.rel (!%p26_p9) target bundleno = 21 (0x15), region = 119 }
 0x4ed   : > { %s4813_s18 = smov %s4803_s27 }
 0x4ee   : > { %s4814_s19 = smov %s4804_s6 }
 0x4f3   :  { %2395 = vsyncpa [#allocation7], 1 }
 0x4f4   :  { %2397 = vsyncpa [#allocation7 + $0x1], 1 }
 0x4f5   :  { %2398 = vsyncpa [#allocation10], 1 }
 0x4f6   :  { %2400 = vsyncpa [#allocation10 + $0x1], 1 }
 0x4f7   :  { %2401 = vsyncpa [#allocation8], 1 }
 0x4f8   :  { %2403 = vsyncpa [#allocation8 + $0x1], 1 }

</bundles_post_ra>
